<compile_context>
chip_gen: v5e
topology: v5e:2x2
jax: 0.10.0
libtpu: 0.0.40
codegen_flags: <defaults>
</compile_context>

<pallas_src>
import jax
import jax.numpy as jnp
from jax.experimental import pallas as pl
from jax.experimental.pallas import tpu as pltpu


DILATIONS = (20, 40, 80)
LANE = 128


def _rup(n, m):
    return ((n + m - 1) // m) * m


def unet_block_kernel(x_ref, temb_ref,
                      wpw_ref, bpw_ref,
                      wdil_ref,
                      wtr_ref, btr_ref,
                      wc_ref, bc_ref,
                      out_ref):
    f32 = jnp.float32
    bf16 = jnp.bfloat16

    Bt, L, Cp = x_ref.shape
    Hp = wdil_ref.shape[2]
    Lo = out_ref.shape[1]                 # L == 2 * Lo (de-interleaved halves)

    xv = x_ref[...]                       # (Bt, L, Cp) bf16
    xm = xv.reshape(Bt * L, Cp)           # flattened rows for the matmuls

    def mm(a, b):
        # bf16 operands (already cast once), f32 MXU accumulation.
        return jnp.dot(a, b, preferred_element_type=f32)

    def shift_halves(h, s):
        # h: (Bt, 2*Lo, N); rows [:Lo] are even positions, [Lo:] odd.
        # result[r] = half[r + s]; out-of-range rows are zero (conv padding).
        a = abs(s)
        if a == 0:
            return h
        if a >= Lo:
            return jnp.zeros_like(h)
        z = jnp.zeros((h.shape[0], a, h.shape[2]), h.dtype)
        top, bot = h[:, :Lo], h[:, Lo:]
        if s > 0:
            top = jnp.concatenate([top[:, a:], z], axis=1)
            bot = jnp.concatenate([bot[:, a:], z], axis=1)
        else:
            top = jnp.concatenate([z, top[:, :Lo - a]], axis=1)
            bot = jnp.concatenate([z, bot[:, :Lo - a]], axis=1)
        return jnp.concatenate([top, bot], axis=1)

    # ---- all four 1x1 branch convs fused into a single matmul ----
    hall = mm(xm, wpw_ref[...]) + bpw_ref[...]            # (Bt*L, 4*Hp) f32
    hall = hall.astype(bf16).reshape(Bt, L, 4 * Hp)       # single bf16 cast

    # ---- dilated k=3 convs: static shifts + one matmul per branch ----
    parts = [hall[..., :Hp]]                              # branch1 output (bf16)
    for i, d in enumerate(DILATIONS):
        h = hall[..., (i + 1) * Hp:(i + 2) * Hp]          # (Bt, L, Hp) bf16
        s = d // 2                                        # shift in de-interleaved rows
        taps = jnp.concatenate(
            [shift_halves(h, -s), h, shift_halves(h, s)], axis=-1)   # (Bt, L, 3*Hp) bf16
        y = mm(taps.reshape(Bt * L, 3 * Hp), wdil_ref[i])            # (Bt*L, Hp) f32
        parts.append(y.astype(bf16).reshape(Bt, L, Hp))   # branch bias folded into btr
    cat = jnp.concatenate(parts, axis=-1).reshape(Bt * L, 4 * Hp)    # bf16

    # ---- transform 1x1 conv + residual + ReLU (f32 elementwise) ----
    x_res = mm(cat, wtr_ref[...]) + btr_ref[...]          # (Bt*L, Cp) f32
    x_blk = jnp.maximum(xm.astype(f32) + x_res, 0.0).reshape(Bt, L, Cp)

    # ---- add precomputed time embedding (hoisted MLP), cast once to bf16 ----
    xt = (x_blk + temb_ref[...]).astype(bf16)             # (Bt, L, Cp) bf16

    # ---- final Conv1d(C, Cout, k=4, stride=2, padding=1) ----
    # rows [0, Lo) are x[2o], rows [Lo, 2Lo) are x[2o+1].
    e = xt[:, :Lo]                                         # x[2o]     (tap 1)
    od = xt[:, Lo:]                                        # x[2o+1]   (tap 2)
    z1 = jnp.zeros((Bt, 1, Cp), bf16)
    prev_od = jnp.concatenate([z1, od[:, :Lo - 1]], axis=1)  # x[2o-1]  (tap 0)
    next_e = jnp.concatenate([e[:, 1:], z1], axis=1)         # x[2o+2]  (tap 3)

    # per-tap matmuls accumulated in f32 (no (Lo, 4*Cp) concat temporary)
    y = (mm(prev_od.reshape(Bt * Lo, Cp), wc_ref[0])
         + mm(e.reshape(Bt * Lo, Cp), wc_ref[1])
         + mm(od.reshape(Bt * Lo, Cp), wc_ref[2])
         + mm(next_e.reshape(Bt * Lo, Cp), wc_ref[3])
         + bc_ref[...])                                    # (Bt*Lo, Cop) f32

    out_ref[...] = y.reshape(Bt, Lo, out_ref.shape[2]).astype(out_ref.dtype)


def unet_block_pallas(x_ncl, t, p):
    """x_ncl: (B, C, L) float32 (PyTorch NCW), t: (B, T)."""
    B, C, L = x_ncl.shape
    assert L % 2 == 0, "final stride-2 conv assumes even L"
    assert all(d % 2 == 0 for d in DILATIONS), \
        "de-interleave + half-shift trick requires even dilations"
    H = C // 2
    Cout = p["wc"].shape[0]
    Lo = L // 2
    Cp, Hp, Cop = _rup(C, LANE), _rup(H, LANE), _rup(Cout, LANE)
    f32, bf16 = jnp.float32, jnp.bfloat16

    def padw(a, shape, dtype=f32):
        out = jnp.zeros(shape, dtype)
        return out.at[tuple(slice(0, s) for s in a.shape)].set(a.astype(dtype))

    # input: NCW -> NLC, de-interleave (even rows then odd), pad lanes, bf16
    x_blc = jnp.transpose(x_ncl, (0, 2, 1))                      # (B, L, C)
    x_perm = jnp.concatenate([x_blc[:, 0::2, :], x_blc[:, 1::2, :]], axis=1)
    x_in = padw(x_perm, (B, L, Cp), bf16)

    # fused pointwise weights: [branch1 | pre2 | pre3 | pre4] -> (Cp, 4*Hp) bf16
    pw_blocks = [padw(p["w1"][:, :, 0].T, (Cp, Hp), bf16)]
    pw_bias = [padw(p["b1"][None], (1, Hp))]
    for i in range(3):
        pw_blocks.append(padw(p["wpa"][i, :, :, 0].T, (Cp, Hp), bf16))
        pw_bias.append(padw(p["bpa"][i][None], (1, Hp)))
    w_pw = jnp.concatenate(pw_blocks, axis=1)                    # (Cp, 4*Hp) bf16
    b_pw = jnp.concatenate(pw_bias, axis=1)                      # (1, 4*Hp) f32

    # dilated conv weights: per branch, vstack of the 3 tap matrices
    w_dil = jnp.stack([
        jnp.concatenate([padw(p["wpb"][i, :, :, k].T, (Hp, Hp), bf16)
                         for k in range(3)], axis=0)
        for i in range(3)], axis=0)                              # (3, 3*Hp, Hp) bf16

    # transform 1x1: vstack of 4 per-branch (H, C) blocks; fold dilated biases
    tr = p["wtr"][:, :, 0]                                       # (C, 2C)
    w_tr = jnp.concatenate(
        [padw(tr[:, j * H:(j + 1) * H].T, (Hp, Cp), bf16) for j in range(4)],
        axis=0)                                                  # (4*Hp, Cp) bf16
    btr_fold = p["btr"] + sum(p["bpb"][i] @ tr[:, (i + 1) * H:(i + 2) * H].T
                              for i in range(3))
    b_tr = padw(btr_fold[None], (1, Cp))

    # time MLP hoisted out of the kernel: one batched XLA matmul + ReLU
    temb = jax.nn.relu(t @ p["wt"].T + p["bt"])                  # (B, C) f32
    temb_in = padw(temb[:, None, :], (B, 1, Cp))                 # (B, 1, Cp) f32

    # final conv: stacked per-tap matrices (4, Cp, Cop)
    w_c = jnp.stack([padw(p["wc"][:, :, k].T, (Cp, Cop), bf16) for k in range(4)],
                    axis=0)                                      # (4, Cp, Cop) bf16
    b_c = padw(p["bc"][None], (1, Cop))

    # ---- pack several batch elements per grid step when L/B are small ----
    def pick_bt():
        if L % 16 != 0:          # keep in-kernel reshapes sublane-tile aligned
            return 1
        per_batch = L * max(Cp, 4 * Hp) * 4 * 12    # rough f32 temporaries bound
        budget = 8 << 20
        for cand in range(B, 0, -1):
            if B % cand == 0 and cand * per_batch <= budget:
                return cand
        return 1
    Bt = pick_bt()

    # explicit VMEM limit from the real footprint (weights single-buffered)
    weight_bytes = sum(int(a.size) * a.dtype.itemsize
                       for a in (w_pw, b_pw, w_dil, w_tr, b_tr, w_c, b_c))
    io_bytes = 2 * (Bt * L * Cp * 2 + Bt * Lo * Cop * 4 + Bt * Cp * 4)
    temp_bytes = Bt * L * max(4 * Hp, Cp) * 4 * 12
    est = weight_bytes + io_bytes + temp_bytes
    vmem_limit = int(min(max(2 * est, 32 << 20), 64 << 20))

    def wspec(arr):
        nd = arr.ndim
        return pl.BlockSpec(arr.shape, lambda b, nd=nd: (0,) * nd,
                            pipeline_mode=pl.Buffered(1))        # constant -> single buffer

    out = pl.pallas_call(
        unet_block_kernel,
        out_shape=jax.ShapeDtypeStruct((B, Lo, Cop), jnp.float32),
        grid_spec=pltpu.PrefetchScalarGridSpec(
            num_scalar_prefetch=0,
            grid=(B // Bt,),
            in_specs=[
                pl.BlockSpec((Bt, L, Cp), lambda b: (b, 0, 0)),
                pl.BlockSpec((Bt, 1, Cp), lambda b: (b, 0, 0)),
                wspec(w_pw), wspec(b_pw),
                wspec(w_dil),
                wspec(w_tr), wspec(b_tr),
                wspec(w_c), wspec(b_c),
            ],
            out_specs=pl.BlockSpec((Bt, Lo, Cop), lambda b: (b, 0, 0)),
        ),
        compiler_params=pltpu.CompilerParams(
            dimension_semantics=("parallel",),
            vmem_limit_bytes=vmem_limit),
    )(x_in, temb_in, w_pw, b_pw, w_dil, w_tr, b_tr, w_c, b_c)

    # drop channel padding, back to PyTorch NCW.
    # (If the consumer tolerates bf16 / NLC, emit bf16 out_shape and skip this.)
    return jnp.transpose(out[:, :, :Cout], (0, 2, 1))            # (B, Cout, Lo)


# -------------------- pure-JAX reference (PyTorch semantics, NCW) -----------
def ref_forward(x, t, p):
    def conv1d(x, w, b, stride=1, padding=0, dilation=1):
        y = jax.lax.conv_general_dilated(
            x, w, window_strides=(stride,), padding=[(padding, padding)],
            rhs_dilation=(dilation,), dimension_numbers=("NCH", "OIH", "NCH"))
        return y + b[None, :, None]

    x1 = conv1d(x, p["w1"], p["b1"])
    outs = [x1]
    for i, d in enumerate(DILATIONS):
        h = conv1d(x, p["wpa"][i], p["bpa"][i])
        outs.append(conv1d(h, p["wpb"][i], p["bpb"][i], padding=d, dilation=d))
    xcat = jnp.concatenate(outs, axis=1)
    xres = conv1d(xcat, p["wtr"], p["btr"])
    xblk = jax.nn.relu(x + xres)
    temb = jax.nn.relu(t @ p["wt"].T + p["bt"])
    xt = xblk + temb[:, :, None]
    return conv1d(xt, p["wc"], p["bc"], stride=2, padding=1)


def init_params(key, C, Cout, T):
    H = C // 2
    ks = jax.random.split(key, 16)
    n = lambda k, shape: 0.1 * jax.random.normal(k, shape, jnp.float32)
    return {
        "w1": n(ks[0], (H, C, 1)), "b1": n(ks[1], (H,)),
        "wpa": n(ks[2], (3, H, C, 1)), "bpa": n(ks[3], (3, H)),
        "wpb": n(ks[4], (3, H, H, 3)), "bpb": n(ks[5], (3, H)),
        "wtr": n(ks[6], (C, 2 * C, 1)), "btr": n(ks[7], (C,)),
        "wt": n(ks[8], (C, T)), "bt": n(ks[9], (C,)),
        "wc": n(ks[10], (Cout, C, 4)), "bc": n(ks[11], (Cout,)),
    }


if __name__ == "__main__":
    B, C, L = 2, 4, 16          # batch, in_channels, sequence length
    Cout, T = 8, 32             # out_channels, time_emb_dim

    key = jax.random.PRNGKey(0)
    kx, kt, kp = jax.random.split(key, 3)
    x = jax.random.normal(kx, (B, C, L), jnp.float32)      # PyTorch NCW input
    t = jax.random.normal(kt, (B, T), jnp.float32)
    params = init_params(kp, C, Cout, T)

    out = jax.block_until_ready(unet_block_pallas(x, t, params))
    ref = jax.block_until_ready(ref_forward(x, t, params))

    err = float(jnp.max(jnp.abs(out - ref)))
    assert out.shape == (B, Cout, L // 2), out.shape
    # activations + input run in bf16 (f32 accumulation) -> looser tolerance
    assert err < 5e-2, f"max abs err {err}"
    print("KERNEL_OK")
</pallas_src>

<mosaic_0001>
module attributes {stable_mosaic.version = 11 : i64} {
  func.func @unet_block_kernel(%arg0: i32, %arg1: memref<2x16x128xbf16, #tpu.memory_space<vmem>>, %arg2: memref<2x1x128xf32, #tpu.memory_space<vmem>>, %arg3: memref<128x512xbf16, #tpu.memory_space<vmem>>, %arg4: memref<1x512xf32, #tpu.memory_space<vmem>>, %arg5: memref<3x384x128xbf16, #tpu.memory_space<vmem>>, %arg6: memref<512x128xbf16, #tpu.memory_space<vmem>>, %arg7: memref<1x128xf32, #tpu.memory_space<vmem>>, %arg8: memref<4x128x128xbf16, #tpu.memory_space<vmem>>, %arg9: memref<1x128xf32, #tpu.memory_space<vmem>>, %arg10: memref<2x8x128xf32, #tpu.memory_space<vmem>>) attributes {dimension_semantics = [#tpu.dimension_semantics<parallel>], iteration_bounds = array<i64: 1>, scalar_prefetch = 0 : i64, scratch_operands = 0 : i64, tpu.core_type = #tpu.core_type<tc>, window_params = [{transform_indices = @transform_0, window_bounds = array<i64: 2, 16, 128>}, {transform_indices = @transform_1, window_bounds = array<i64: 2, 1, 128>}, {pipeline_mode = #tpu.pipeline_mode<synchronous>, transform_indices = @transform_2, window_bounds = array<i64: 128, 512>}, {pipeline_mode = #tpu.pipeline_mode<synchronous>, transform_indices = @transform_3, window_bounds = array<i64: 1, 512>}, {pipeline_mode = #tpu.pipeline_mode<synchronous>, transform_indices = @transform_4, window_bounds = array<i64: 3, 384, 128>}, {pipeline_mode = #tpu.pipeline_mode<synchronous>, transform_indices = @transform_5, window_bounds = array<i64: 512, 128>}, {pipeline_mode = #tpu.pipeline_mode<synchronous>, transform_indices = @transform_6, window_bounds = array<i64: 1, 128>}, {pipeline_mode = #tpu.pipeline_mode<synchronous>, transform_indices = @transform_7, window_bounds = array<i64: 4, 128, 128>}, {pipeline_mode = #tpu.pipeline_mode<synchronous>, transform_indices = @transform_8, window_bounds = array<i64: 1, 128>}, {transform_indices = @transform_9, window_bounds = array<i64: 2, 8, 128>}]} {
    %c0 = arith.constant 0 : index
    %c0_0 = arith.constant 0 : index
    %c0_1 = arith.constant 0 : index
    %0 = vector.load %arg1[%c0, %c0_0, %c0_1] : memref<2x16x128xbf16, #tpu.memory_space<vmem>>, vector<2x16x128xbf16>
    %1 = vector.shape_cast %0 : vector<2x16x128xbf16> to vector<32x128xbf16>
    %c0_2 = arith.constant 0 : index
    %c0_3 = arith.constant 0 : index
    %2 = vector.load %arg3[%c0_2, %c0_3] : memref<128x512xbf16, #tpu.memory_space<vmem>>, vector<128x512xbf16>
    %cst = arith.constant dense<0.000000e+00> : vector<32x512xf32>
    %3 = tpu.matmul %1, %2, %cst {dimension_numbers = #tpu.dot_dimension_numbers<[1], [0], [0], [1], [0, 0, 1, 1], [], []>} : vector<32x128xbf16>, vector<128x512xbf16>, vector<32x512xf32> -> vector<32x512xf32>
    %c0_4 = arith.constant 0 : index
    %c0_5 = arith.constant 0 : index
    %4 = vector.load %arg4[%c0_4, %c0_5] : memref<1x512xf32, #tpu.memory_space<vmem>>, vector<1x512xf32>
    %5 = vector.broadcast %4 : vector<1x512xf32> to vector<32x512xf32>
    %6 = arith.addf %3, %5 : vector<32x512xf32>
    %7 = arith.truncf %6 : vector<32x512xf32> to vector<32x512xbf16>
    %8 = vector.shape_cast %7 : vector<32x512xbf16> to vector<2x16x512xbf16>
    %9 = vector.extract_strided_slice %8 {offsets = [0, 0, 0], sizes = [2, 16, 128], strides = [1, 1, 1]} : vector<2x16x512xbf16> to vector<2x16x128xbf16>
    %10 = vector.extract_strided_slice %8 {offsets = [0, 0, 128], sizes = [2, 16, 128], strides = [1, 1, 1]} : vector<2x16x512xbf16> to vector<2x16x128xbf16>
    %cst_6 = arith.constant 0.000000e+00 : bf16
    %11 = vector.broadcast %cst_6 : bf16 to vector<2x16x128xbf16>
    %cst_7 = arith.constant 0.000000e+00 : bf16
    %12 = vector.broadcast %cst_7 : bf16 to vector<2x16x128xbf16>
    %13 = tpu.concatenate %11, %10, %12 in 2 : vector<2x16x128xbf16>, vector<2x16x128xbf16>, vector<2x16x128xbf16> -> vector<2x16x384xbf16>
    %14 = vector.shape_cast %13 : vector<2x16x384xbf16> to vector<32x384xbf16>
    %c0_8 = arith.constant 0 : index
    %c0_9 = arith.constant 0 : index
    %c0_10 = arith.constant 0 : index
    %15 = vector.load %arg5[%c0_8, %c0_9, %c0_10] : memref<3x384x128xbf16, #tpu.memory_space<vmem>>, vector<1x384x128xbf16>
    %16 = vector.shape_cast %15 : vector<1x384x128xbf16> to vector<384x128xbf16>
    %cst_11 = arith.constant dense<0.000000e+00> : vector<32x128xf32>
    %17 = tpu.matmul %14, %16, %cst_11 {dimension_numbers = #tpu.dot_dimension_numbers<[1], [0], [0], [1], [0, 0, 1, 1], [], []>} : vector<32x384xbf16>, vector<384x128xbf16>, vector<32x128xf32> -> vector<32x128xf32>
    %18 = arith.truncf %17 : vector<32x128xf32> to vector<32x128xbf16>
    %19 = vector.shape_cast %18 : vector<32x128xbf16> to vector<2x16x128xbf16>
    %20 = vector.extract_strided_slice %8 {offsets = [0, 0, 256], sizes = [2, 16, 128], strides = [1, 1, 1]} : vector<2x16x512xbf16> to vector<2x16x128xbf16>
    %cst_12 = arith.constant 0.000000e+00 : bf16
    %21 = vector.broadcast %cst_12 : bf16 to vector<2x16x128xbf16>
    %cst_13 = arith.constant 0.000000e+00 : bf16
    %22 = vector.broadcast %cst_13 : bf16 to vector<2x16x128xbf16>
    %23 = tpu.concatenate %21, %20, %22 in 2 : vector<2x16x128xbf16>, vector<2x16x128xbf16>, vector<2x16x128xbf16> -> vector<2x16x384xbf16>
    %24 = vector.shape_cast %23 : vector<2x16x384xbf16> to vector<32x384xbf16>
    %c1 = arith.constant 1 : index
    %c0_14 = arith.constant 0 : index
    %c0_15 = arith.constant 0 : index
    %25 = vector.load %arg5[%c1, %c0_14, %c0_15] : memref<3x384x128xbf16, #tpu.memory_space<vmem>>, vector<1x384x128xbf16>
    %26 = vector.shape_cast %25 : vector<1x384x128xbf16> to vector<384x128xbf16>
    %cst_16 = arith.constant dense<0.000000e+00> : vector<32x128xf32>
    %27 = tpu.matmul %24, %26, %cst_16 {dimension_numbers = #tpu.dot_dimension_numbers<[1], [0], [0], [1], [0, 0, 1, 1], [], []>} : vector<32x384xbf16>, vector<384x128xbf16>, vector<32x128xf32> -> vector<32x128xf32>
    %28 = arith.truncf %27 : vector<32x128xf32> to vector<32x128xbf16>
    %29 = vector.shape_cast %28 : vector<32x128xbf16> to vector<2x16x128xbf16>
    %30 = vector.extract_strided_slice %8 {offsets = [0, 0, 384], sizes = [2, 16, 128], strides = [1, 1, 1]} : vector<2x16x512xbf16> to vector<2x16x128xbf16>
    %cst_17 = arith.constant 0.000000e+00 : bf16
    %31 = vector.broadcast %cst_17 : bf16 to vector<2x16x128xbf16>
    %cst_18 = arith.constant 0.000000e+00 : bf16
    %32 = vector.broadcast %cst_18 : bf16 to vector<2x16x128xbf16>
    %33 = tpu.concatenate %31, %30, %32 in 2 : vector<2x16x128xbf16>, vector<2x16x128xbf16>, vector<2x16x128xbf16> -> vector<2x16x384xbf16>
    %34 = vector.shape_cast %33 : vector<2x16x384xbf16> to vector<32x384xbf16>
    %c2 = arith.constant 2 : index
    %c0_19 = arith.constant 0 : index
    %c0_20 = arith.constant 0 : index
    %35 = vector.load %arg5[%c2, %c0_19, %c0_20] : memref<3x384x128xbf16, #tpu.memory_space<vmem>>, vector<1x384x128xbf16>
    %36 = vector.shape_cast %35 : vector<1x384x128xbf16> to vector<384x128xbf16>
    %cst_21 = arith.constant dense<0.000000e+00> : vector<32x128xf32>
    %37 = tpu.matmul %34, %36, %cst_21 {dimension_numbers = #tpu.dot_dimension_numbers<[1], [0], [0], [1], [0, 0, 1, 1], [], []>} : vector<32x384xbf16>, vector<384x128xbf16>, vector<32x128xf32> -> vector<32x128xf32>
    %38 = arith.truncf %37 : vector<32x128xf32> to vector<32x128xbf16>
    %39 = vector.shape_cast %38 : vector<32x128xbf16> to vector<2x16x128xbf16>
    %40 = tpu.concatenate %9, %19, %29, %39 in 2 : vector<2x16x128xbf16>, vector<2x16x128xbf16>, vector<2x16x128xbf16>, vector<2x16x128xbf16> -> vector<2x16x512xbf16>
    %41 = vector.shape_cast %40 : vector<2x16x512xbf16> to vector<32x512xbf16>
    %c0_22 = arith.constant 0 : index
    %c0_23 = arith.constant 0 : index
    %42 = vector.load %arg6[%c0_22, %c0_23] : memref<512x128xbf16, #tpu.memory_space<vmem>>, vector<512x128xbf16>
    %cst_24 = arith.constant dense<0.000000e+00> : vector<32x128xf32>
    %43 = tpu.matmul %41, %42, %cst_24 {dimension_numbers = #tpu.dot_dimension_numbers<[1], [0], [0], [1], [0, 0, 1, 1], [], []>} : vector<32x512xbf16>, vector<512x128xbf16>, vector<32x128xf32> -> vector<32x128xf32>
    %c0_25 = arith.constant 0 : index
    %c0_26 = arith.constant 0 : index
    %44 = vector.load %arg7[%c0_25, %c0_26] : memref<1x128xf32, #tpu.memory_space<vmem>>, vector<1x128xf32>
    %45 = vector.broadcast %44 : vector<1x128xf32> to vector<32x128xf32>
    %46 = arith.addf %43, %45 : vector<32x128xf32>
    %47 = arith.extf %1 : vector<32x128xbf16> to vector<32x128xf32>
    %48 = arith.addf %47, %46 : vector<32x128xf32>
    %cst_27 = arith.constant 0.000000e+00 : f32
    %49 = vector.broadcast %cst_27 : f32 to vector<32x128xf32>
    %50 = arith.maximumf %48, %49 : vector<32x128xf32>
    %51 = vector.shape_cast %50 : vector<32x128xf32> to vector<2x16x128xf32>
    %c0_28 = arith.constant 0 : index
    %c0_29 = arith.constant 0 : index
    %c0_30 = arith.constant 0 : index
    %52 = vector.load %arg2[%c0_28, %c0_29, %c0_30] : memref<2x1x128xf32, #tpu.memory_space<vmem>>, vector<2x1x128xf32>
    %53 = vector.broadcast %52 : vector<2x1x128xf32> to vector<2x16x128xf32>
    %54 = arith.addf %51, %53 : vector<2x16x128xf32>
    %55 = arith.truncf %54 : vector<2x16x128xf32> to vector<2x16x128xbf16>
    %56 = vector.extract_strided_slice %55 {offsets = [0, 0, 0], sizes = [2, 8, 128], strides = [1, 1, 1]} : vector<2x16x128xbf16> to vector<2x8x128xbf16>
    %57 = vector.extract_strided_slice %55 {offsets = [0, 8, 0], sizes = [2, 8, 128], strides = [1, 1, 1]} : vector<2x16x128xbf16> to vector<2x8x128xbf16>
    %cst_31 = arith.constant 0.000000e+00 : bf16
    %58 = vector.broadcast %cst_31 : bf16 to vector<2x1x128xbf16>
    %59 = vector.extract_strided_slice %57 {offsets = [0, 0, 0], sizes = [2, 7, 128], strides = [1, 1, 1]} : vector<2x8x128xbf16> to vector<2x7x128xbf16>
    %60 = tpu.concatenate %58, %59 in 1 : vector<2x1x128xbf16>, vector<2x7x128xbf16> -> vector<2x8x128xbf16>
    %61 = vector.extract_strided_slice %56 {offsets = [0, 1, 0], sizes = [2, 7, 128], strides = [1, 1, 1]} : vector<2x8x128xbf16> to vector<2x7x128xbf16>
    %62 = tpu.concatenate %61, %58 in 1 : vector<2x7x128xbf16>, vector<2x1x128xbf16> -> vector<2x8x128xbf16>
    %63 = vector.shape_cast %60 : vector<2x8x128xbf16> to vector<16x128xbf16>
    %c0_32 = arith.constant 0 : index
    %c0_33 = arith.constant 0 : index
    %c0_34 = arith.constant 0 : index
    %64 = vector.load %arg8[%c0_32, %c0_33, %c0_34] : memref<4x128x128xbf16, #tpu.memory_space<vmem>>, vector<1x128x128xbf16>
    %65 = vector.shape_cast %64 : vector<1x128x128xbf16> to vector<128x128xbf16>
    %cst_35 = arith.constant dense<0.000000e+00> : vector<16x128xf32>
    %66 = tpu.matmul %63, %65, %cst_35 {dimension_numbers = #tpu.dot_dimension_numbers<[1], [0], [0], [1], [0, 0, 1, 1], [], []>} : vector<16x128xbf16>, vector<128x128xbf16>, vector<16x128xf32> -> vector<16x128xf32>
    %67 = vector.shape_cast %56 : vector<2x8x128xbf16> to vector<16x128xbf16>
    %c1_36 = arith.constant 1 : index
    %c0_37 = arith.constant 0 : index
    %c0_38 = arith.constant 0 : index
    %68 = vector.load %arg8[%c1_36, %c0_37, %c0_38] : memref<4x128x128xbf16, #tpu.memory_space<vmem>>, vector<1x128x128xbf16>
    %69 = vector.shape_cast %68 : vector<1x128x128xbf16> to vector<128x128xbf16>
    %cst_39 = arith.constant dense<0.000000e+00> : vector<16x128xf32>
    %70 = tpu.matmul %67, %69, %cst_39 {dimension_numbers = #tpu.dot_dimension_numbers<[1], [0], [0], [1], [0, 0, 1, 1], [], []>} : vector<16x128xbf16>, vector<128x128xbf16>, vector<16x128xf32> -> vector<16x128xf32>
    %71 = arith.addf %66, %70 : vector<16x128xf32>
    %72 = vector.shape_cast %57 : vector<2x8x128xbf16> to vector<16x128xbf16>
    %c2_40 = arith.constant 2 : index
    %c0_41 = arith.constant 0 : index
    %c0_42 = arith.constant 0 : index
    %73 = vector.load %arg8[%c2_40, %c0_41, %c0_42] : memref<4x128x128xbf16, #tpu.memory_space<vmem>>, vector<1x128x128xbf16>
    %74 = vector.shape_cast %73 : vector<1x128x128xbf16> to vector<128x128xbf16>
    %cst_43 = arith.constant dense<0.000000e+00> : vector<16x128xf32>
    %75 = tpu.matmul %72, %74, %cst_43 {dimension_numbers = #tpu.dot_dimension_numbers<[1], [0], [0], [1], [0, 0, 1, 1], [], []>} : vector<16x128xbf16>, vector<128x128xbf16>, vector<16x128xf32> -> vector<16x128xf32>
    %76 = arith.addf %71, %75 : vector<16x128xf32>
    %77 = vector.shape_cast %62 : vector<2x8x128xbf16> to vector<16x128xbf16>
    %c3 = arith.constant 3 : index
    %c0_44 = arith.constant 0 : index
    %c0_45 = arith.constant 0 : index
    %78 = vector.load %arg8[%c3, %c0_44, %c0_45] : memref<4x128x128xbf16, #tpu.memory_space<vmem>>, vector<1x128x128xbf16>
    %79 = vector.shape_cast %78 : vector<1x128x128xbf16> to vector<128x128xbf16>
    %cst_46 = arith.constant dense<0.000000e+00> : vector<16x128xf32>
    %80 = tpu.matmul %77, %79, %cst_46 {dimension_numbers = #tpu.dot_dimension_numbers<[1], [0], [0], [1], [0, 0, 1, 1], [], []>} : vector<16x128xbf16>, vector<128x128xbf16>, vector<16x128xf32> -> vector<16x128xf32>
    %81 = arith.addf %76, %80 : vector<16x128xf32>
    %c0_47 = arith.constant 0 : index
    %c0_48 = arith.constant 0 : index
    %82 = vector.load %arg9[%c0_47, %c0_48] : memref<1x128xf32, #tpu.memory_space<vmem>>, vector<1x128xf32>
    %83 = vector.broadcast %82 : vector<1x128xf32> to vector<16x128xf32>
    %84 = arith.addf %81, %83 : vector<16x128xf32>
    %85 = vector.shape_cast %84 : vector<16x128xf32> to vector<2x8x128xf32>
    %c0_49 = arith.constant 0 : index
    %c0_50 = arith.constant 0 : index
    %c0_51 = arith.constant 0 : index
    %86 = vector.load %arg10[%c0_49, %c0_50, %c0_51] : memref<2x8x128xf32, #tpu.memory_space<vmem>>, vector<2x8x128xf32>
    tpu.vector_store %arg10[%c0_49, %c0_50, %c0_51], %85 {strides = array<i32>} : memref<2x8x128xf32, #tpu.memory_space<vmem>>, vector<2x8x128xf32>,
    return
  }
  func.func @transform_0(%arg0: i32) -> (i32, i32, i32) {
    %c0_i32 = arith.constant 0 : i32
    %c0_i32_0 = arith.constant 0 : i32
    %c0_i32_1 = arith.constant 0 : i32
    return %arg0, %c0_i32, %c0_i32_0 : i32, i32, i32
  }
  func.func @transform_1(%arg0: i32) -> (i32, i32, i32) {
    %c0_i32 = arith.constant 0 : i32
    %c0_i32_0 = arith.constant 0 : i32
    %c0_i32_1 = arith.constant 0 : i32
    return %arg0, %c0_i32, %c0_i32_0 : i32, i32, i32
  }
  func.func @transform_2(%arg0: i32) -> (i32, i32) {
    %c0_i32 = arith.constant 0 : i32
    %c0_i32_0 = arith.constant 0 : i32
    %c0_i32_1 = arith.constant 0 : i32
    return %c0_i32, %c0_i32_0 : i32, i32
  }
  func.func @transform_3(%arg0: i32) -> (i32, i32) {
    %c0_i32 = arith.constant 0 : i32
    %c0_i32_0 = arith.constant 0 : i32
    %c0_i32_1 = arith.constant 0 : i32
    return %c0_i32, %c0_i32_0 : i32, i32
  }
  func.func @transform_4(%arg0: i32) -> (i32, i32, i32) {
    %c0_i32 = arith.constant 0 : i32
    %c0_i32_0 = arith.constant 0 : i32
    %c0_i32_1 = arith.constant 0 : i32
    %c0_i32_2 = arith.constant 0 : i32
    return %c0_i32, %c0_i32_0, %c0_i32_1 : i32, i32, i32
  }
  func.func @transform_5(%arg0: i32) -> (i32, i32) {
    %c0_i32 = arith.constant 0 : i32
    %c0_i32_0 = arith.constant 0 : i32
    %c0_i32_1 = arith.constant 0 : i32
    return %c0_i32, %c0_i32_0 : i32, i32
  }
  func.func @transform_6(%arg0: i32) -> (i32, i32) {
    %c0_i32 = arith.constant 0 : i32
    %c0_i32_0 = arith.constant 0 : i32
    %c0_i32_1 = arith.constant 0 : i32
    return %c0_i32, %c0_i32_0 : i32, i32
  }
  func.func @transform_7(%arg0: i32) -> (i32, i32, i32) {
    %c0_i32 = arith.constant 0 : i32
    %c0_i32_0 = arith.constant 0 : i32
    %c0_i32_1 = arith.constant 0 : i32
    %c0_i32_2 = arith.constant 0 : i32
    return %c0_i32, %c0_i32_0, %c0_i32_1 : i32, i32, i32
  }
  func.func @transform_8(%arg0: i32) -> (i32, i32) {
    %c0_i32 = arith.constant 0 : i32
    %c0_i32_0 = arith.constant 0 : i32
    %c0_i32_1 = arith.constant 0 : i32
    return %c0_i32, %c0_i32_0 : i32, i32
  }
  func.func @transform_9(%arg0: i32) -> (i32, i32, i32) {
    %c0_i32 = arith.constant 0 : i32
    %c0_i32_0 = arith.constant 0 : i32
    %c0_i32_1 = arith.constant 0 : i32
    return %arg0, %c0_i32, %c0_i32_0 : i32, i32, i32
  }
}

</mosaic_0001>

<bundles_post_ra>
// kernel: tpu_custom_call.1
= control target key start
LH: loop header
LB: loop body
LE: loop exit
PB: predicated region body
PF: predicated region fallthrough
CT: control target
= control target key end

     0   :  { %14 = vsyncpa [#allocation3], 0  ;;  %s3285_s0 = inlined_call_operand.hbm [shape: bf16[2,16,128], index: 0, kind: input, shape index: {}]   ;;  %s3286_s1 = inlined_call_operand.hbm [shape: f32[2,1,128], index: 1, kind: input, shape index: {}]   ;;  %s3287_s2 = inlined_call_operand.hbm [shape: bf16[128,512], index: 2, kind: input, shape index: {}]   ;;  %s3288_s3 = inlined_call_operand.hbm [shape: f32[1,512], index: 3, kind: input, shape index: {}]   ;;  %s3289_s4 = inlined_call_operand.hbm [shape: bf16[3,384,128], index: 4, kind: input, shape index: {}]   ;;  %s3290_s5 = inlined_call_operand.hbm [shape: bf16[512,128], index: 5, kind: input, shape index: {}]   ;;  %s3291_s6 = inlined_call_operand.vmem [shape: f32[1,128], index: 6, kind: input, shape index: {}]   ;;  %s3292_s7 = inlined_call_operand.hbm [shape: bf16[4,128,128], index: 7, kind: input, shape index: {}]   ;;  %s3293_s8 = inlined_call_operand.vmem [shape: f32[1,128], index: 8, kind: input, shape index: {}]   ;;  %s3294_s9 = inlined_call_operand.hbm [shape: f32[2,8,128], index: 9, kind: output, shape index: {}]  }
   0x1   :  { %15 = vsyncpa [#allocation6], 0 }
   0x2   :  { %16 = vsyncpa [#allocation9], 0 }
   0x3   :  { %17 = vsyncpa [#allocation12], 0  ;;  %s36_s11 = sshll.u32 %s3286_s1, 4  ;;  %s37_s11 = int_to_ptr.hbm [resolvable:$true] %s36_s11 }
   0x4   :  { %18 = vsyncpa [#allocation4], 0  ;;  %s3135_s12 = smov [#allocation5]   ;;  %s63_s16 = sshll.u32 %s3288_s3, 4  ;;  %s64_s16 = int_to_ptr.hbm [resolvable:$true] %s63_s16 }
   0x5   :  { %s38_s13 = sshll.u32 %s3135_s12, 4  ;;  %s3136_s17 = smov 16   ;;  %s39_s13 = int_to_ptr.vmem [resolvable:$true] %s38_s13 }
   0x6   :  { %s3137_s18 = smov 1   ;;  %s3138_s19 = smov [#allocation8]  }
   0x7   :  { %44 = dma.hbm_to_vmem [thread:$0]  %s37_s11, 32, %s39_s13, [#allocation6], %s3136_s17, %s3136_s17, %s3137_s18  }
   0x8   :  { %s65_s20 = sshll.u32 %s3138_s19, 4  ;;  %s86_s22 = sshll.u32 %s3290_s5, 4  ;;  %s66_s20 = int_to_ptr.vmem [resolvable:$true] %s65_s20  ;;  %s87_s22 = int_to_ptr.hbm [resolvable:$true] %s86_s22 }
   0x9   :  { %68 = dma.hbm_to_vmem [thread:$0]  %s64_s16, 64, %s66_s20, [#allocation9]  }
   0xa   :  { %s3139_s23 = smov [#allocation11]   ;;  %s23_s26 = sshll.u32 %s3285_s0, 4  ;;  %s24_s26 = int_to_ptr.hbm [resolvable:$true] %s23_s26 }
   0xb   :  { %s88_s24 = sshll.u32 %s3139_s23, 4  ;;  %s3140_s27 = smov 64   ;;  %s89_s24 = int_to_ptr.vmem [resolvable:$true] %s88_s24 }
   0xc   :  { %s3141_s28 = smov 4   ;;  %s3142_s29 = smov [#allocation2]  }
   0xd   :  { %94 = dma.hbm_to_vmem [thread:$0]  %s87_s22, 4096, %s89_s24, [#allocation12], %s3140_s27, %s3140_s27, %s3141_s28  }
   0xe   :  { %s25_s30 = sshll.u32 %s3142_s29, 4  ;;  %s49_s12 = sshll.u32 %s3287_s2, 4  ;;  %s26_s30 = int_to_ptr.vmem [resolvable:$true] %s25_s30  ;;  %s50_s12 = int_to_ptr.hbm [resolvable:$true] %s49_s12 }
   0xf   :  { %31 = dma.hbm_to_vmem [thread:$0]  %s24_s26, 256, %s26_s30, [#allocation3], %s3140_s27, %s3140_s27, %s3141_s28  }
  0x10   :  { %s3143_s5 = smov [#allocation7]   ;;  %s73_s16 = sshll.u32 %s3289_s4, 4  ;;  %s74_s16 = int_to_ptr.hbm [resolvable:$true] %s73_s16 }
  0x11   :  { %s51_s13 = sshll.u32 %s3143_s5, 4  ;;  %s3144_s0 = smov 256   ;;  %s52_s13 = int_to_ptr.vmem [resolvable:$true] %s51_s13 }
  0x12   :  { %57 = dma.hbm_to_vmem [thread:$0]  %s50_s12, 4096, %s52_s13, [#allocation6], %s3144_s0, %s3144_s0, %s3136_s17  }
  0x13   :  { %s101_s20 = sshll.u32 %s3292_s7, 4  ;;  %s3145_s1 = smov [#allocation10]   ;;  %s102_s20 = int_to_ptr.hbm [resolvable:$true] %s101_s20 }
  0x14   :  { %s75_s2 = sshll.u32 %s3145_s1, 4  ;;  %s3146_s21 = smov [#allocation13]   ;;  %s76_s2 = int_to_ptr.vmem [resolvable:$true] %s75_s2 }
  0x15   :  { %81 = dma.hbm_to_vmem [thread:$0]  %s74_s16, 9216, %s76_s2, [#allocation9], %s3140_s27, %s3140_s27, %s3141_s28  }
  0x16   :  { %s103_s22 = sshll.u32 %s3146_s21, 4  ;;  %s104_s22 = int_to_ptr.vmem [resolvable:$true] %s103_s22 }
  0x17   :  { %109 = dma.hbm_to_vmem [thread:$0]  %s102_s20, 4096, %s104_s22, [#allocation12], %s3140_s27, %s3140_s27, %s3141_s28  }
  0x18   :  { %3125 = dma.done.wait [#allocation3], 256  }
  0x19   :  { %3126 = vsyncadd [#allocation3], 4294967040 }
  0x1a   :  { %3127 = dma.done.wait [#allocation6], 4128  }
  0x1b   :  { %3128 = vsyncadd [#allocation6], 4294963168 }
  0x1c   :  { %3129 = dma.done.wait [#allocation9], 9280  }
  0x1d   :  { %3130 = vsyncadd [#allocation9], 4294958016 }
  0x1e   :  { %3131 = dma.done.wait [#allocation12], 8192  }
  0x1f   :  { %3132 = vsyncadd [#allocation12], 4294959104  ;;  %v2185_v0 = vld [vmem:[#allocation7 + $0xe0] sm:$0xf]  ;;  %v2775_v1 = vld [vmem:[#allocation7 + $0xec] sm:$0xf0] }
  0x20   :  { %v2773_v2 = vld [vmem:[#allocation7 + $0xe4] sm:$0xf]  ;;  %v2186_v3 = vor.u32 %v2775_v1, %v2185_v0  ;;  %v2187_v4 = vld [vmem:[#allocation7 + $0xf0] sm:$0xf0]  ;;  %v2193_v5 = vld [vmem:[#allocation7 + $0xe8] sm:$0xf] }
  0x21   :  { %v2776_v6 = vld [vmem:[#allocation7 + $0xf4] sm:$0xf0]  ;;  %v2190_v7 = vor.u32 %v2773_v2, %v2187_v4  ;;  %v2774_v9 = vld [vmem:[#allocation7 + $0xec] sm:$0xf]  ;;  %v2195_v10 = vld [vmem:[#allocation7 + $0xf8] sm:$0xf0] }
  0x22   :  { %v2194_v8 = vor.u32 %v2776_v6, %v2193_v5  ;;  %v2169_v11 = vld [vmem:[#allocation7 + $0xc0] sm:$0xf]  ;;  %359 = vmatpush.bf16.msra.mxu0 %v2186_v3  ;;  %v2198_v12 = vor.u32 %v2774_v9, %v2195_v10  ;;  %v2771_v13 = vld [vmem:[#allocation7 + $0xcc] sm:$0xf0]  ;;  %v2769_v14 = vld [vmem:[#allocation7 + $0xc4] sm:$0xf] }
  0x23   :  { %v2171_v15 = vld [vmem:[#allocation7 + $0xd0] sm:$0xf0]  ;;  %378 = vmatpush.bf16.msra.mxu1 %v2190_v7  ;;  %v2170_v16 = vor.u32 %v2771_v13, %v2169_v11  ;;  %v2177_v18 = vld [vmem:[#allocation7 + $0xc8] sm:$0xf]  ;;  %v2772_v19 = vld [vmem:[#allocation7 + $0xd4] sm:$0xf0] }
  0x24   :  { %397 = vmatpush.bf16.msra.mxu2 %v2194_v8  ;;  %v2174_v17 = vor.u32 %v2769_v14, %v2171_v15  ;;  %v2770_v20 = vld [vmem:[#allocation7 + $0xcc] sm:$0xf]  ;;  %416 = vmatpush.bf16.msra.mxu3 %v2198_v12  ;;  %v2178_v21 = vor.u32 %v2772_v19, %v2177_v18  ;;  %v2179_v22 = vld [vmem:[#allocation7 + $0xd8] sm:$0xf0]  ;;  %v2153_v23 = vld [vmem:[#allocation7 + $0xa0] sm:$0xf] }
  0x25   :  { %v2767_v24 = vld [vmem:[#allocation7 + $0xac] sm:$0xf0]  ;;  %v2182_v25 = vor.u32 %v2770_v20, %v2179_v22  ;;  %v2765_v26 = vld [vmem:[#allocation7 + $0xa4] sm:$0xf]  ;;  %v2155_v27 = vld [vmem:[#allocation7 + $0xb0] sm:$0xf0] }
  0x26   :  { %v2161_v28 = vld [vmem:[#allocation7 + $0xa8] sm:$0xf]  ;;  %360 = vmatpush.bf16.msra.mxu0 %v2170_v16  ;;  %v2154_v29 = vor.u32 %v2767_v24, %v2153_v23  ;;  %v2768_v30 = vld [vmem:[#allocation7 + $0xb4] sm:$0xf0]  ;;  %v2766_v31 = vld [vmem:[#allocation7 + $0xac] sm:$0xf]  ;;  %v2158_v33 = vor.u32 %v2765_v26, %v2155_v27 }
  0x27   :  { %v2163_v32 = vld [vmem:[#allocation7 + $0xb8] sm:$0xf0]  ;;  %379 = vmatpush.bf16.msra.mxu1 %v2174_v17  ;;  %v2162_v34 = vor.u32 %v2768_v30, %v2161_v28  ;;  %v2137_v35 = vld [vmem:[#allocation7 + $0x80] sm:$0xf]  ;;  %v2763_v36 = vld [vmem:[#allocation7 + $0x8c] sm:$0xf0] }
  0x28   :  { %398 = vmatpush.bf16.msra.mxu2 %v2178_v21  ;;  %v2761_v37 = vld [vmem:[#allocation7 + $0x84] sm:$0xf]  ;;  %417 = vmatpush.bf16.msra.mxu3 %v2182_v25  ;;  %v2166_v38 = vor.u32 %v2766_v31, %v2163_v32  ;;  %v2139_v39 = vld [vmem:[#allocation7 + $0x90] sm:$0xf0]  ;;  %v2145_v40 = vld [vmem:[#allocation7 + $0x88] sm:$0xf]  ;;  %v2138_v44 = vor.u32 %v2763_v36, %v2137_v35 }
  0x29   :  { %v2764_v41 = vld [vmem:[#allocation7 + $0x94] sm:$0xf0]  ;;  %v2762_v42 = vld [vmem:[#allocation7 + $0x8c] sm:$0xf]  ;;  %v2147_v43 = vld [vmem:[#allocation7 + $0x98] sm:$0xf0]  ;;  %v2142_v45 = vor.u32 %v2761_v37, %v2139_v39 }
  0x2a   :  { %361 = vmatpush.bf16.msra.mxu0 %v2154_v29  ;;  %v2146_v46 = vor.u32 %v2764_v41, %v2145_v40  ;;  %v2121_v47 = vld [vmem:[#allocation7 + $0x60] sm:$0xf]  ;;  %v2759_v48 = vld [vmem:[#allocation7 + $0x6c] sm:$0xf0]  ;;  %v2757_v49 = vld [vmem:[#allocation7 + $0x64] sm:$0xf]  ;;  %v2150_v50 = vor.u32 %v2762_v42, %v2147_v43 }
  0x2b   :  { %380 = vmatpush.bf16.msra.mxu1 %v2158_v33  ;;  %v2123_v51 = vld [vmem:[#allocation7 + $0x70] sm:$0xf0]  ;;  %v2129_v52 = vld [vmem:[#allocation7 + $0x68] sm:$0xf]  ;;  %v2760_v53 = vld [vmem:[#allocation7 + $0x74] sm:$0xf0]  ;;  %v2122_v56 = vor.u32 %v2759_v48, %v2121_v47 }
  0x2c   :  { %399 = vmatpush.bf16.msra.mxu2 %v2162_v34  ;;  %418 = vmatpush.bf16.msra.mxu3 %v2166_v38  ;;  %v2758_v54 = vld [vmem:[#allocation7 + $0x6c] sm:$0xf]  ;;  %v2131_v55 = vld [vmem:[#allocation7 + $0x78] sm:$0xf0]  ;;  %v2126_v57 = vor.u32 %v2757_v49, %v2123_v51  ;;  %v2130_v58 = vor.u32 %v2760_v53, %v2129_v52  ;;  %v2105_v59 = vld [vmem:[#allocation7 + $0x40] sm:$0xf] }
  0x2d   :  { %v2755_v60 = vld [vmem:[#allocation7 + $0x4c] sm:$0xf0]  ;;  %v2753_v61 = vld [vmem:[#allocation7 + $0x44] sm:$0xf]  ;;  %v2134_v62 = vor.u32 %v2758_v54, %v2131_v55  ;;  %v2107_v63 = vld [vmem:[#allocation7 + $0x50] sm:$0xf0] }
  0x2e   :  { %362 = vmatpush.bf16.msra.mxu0 %v2138_v44  ;;  %v2113_v0 = vld [vmem:[#allocation7 + $0x48] sm:$0xf]  ;;  %v2756_v1 = vld [vmem:[#allocation7 + $0x54] sm:$0xf0]  ;;  %v2754_v2 = vld [vmem:[#allocation7 + $0x4c] sm:$0xf]  ;;  %v2106_v4 = vor.u32 %v2755_v60, %v2105_v59  ;;  %v2110_v5 = vor.u32 %v2753_v61, %v2107_v63 }
  0x2f   :  { %381 = vmatpush.bf16.msra.mxu1 %v2142_v45  ;;  %v2115_v3 = vld [vmem:[#allocation7 + $0x58] sm:$0xf0]  ;;  %v2114_v6 = vor.u32 %v2756_v1, %v2113_v0  ;;  %v2089_v7 = vld [vmem:[#allocation7 + $0x20] sm:$0xf]  ;;  %v2751_v8 = vld [vmem:[#allocation7 + $0x2c] sm:$0xf0] }
  0x30   :  { %400 = vmatpush.bf16.msra.mxu2 %v2146_v46  ;;  %419 = vmatpush.bf16.msra.mxu3 %v2150_v50  ;;  %v2749_v9 = vld [vmem:[#allocation7 + $0x24] sm:$0xf]  ;;  %v2118_v10 = vor.u32 %v2754_v2, %v2115_v3  ;;  %v2091_v11 = vld [vmem:[#allocation7 + $0x30] sm:$0xf0]  ;;  %v2097_v12 = vld [vmem:[#allocation7 + $0x28] sm:$0xf]  ;;  %v2090_v16 = vor.u32 %v2751_v8, %v2089_v7 }
  0x31   :  { %v2752_v13 = vld [vmem:[#allocation7 + $0x34] sm:$0xf0]  ;;  %v2750_v14 = vld [vmem:[#allocation7 + $0x2c] sm:$0xf]  ;;  %v2099_v15 = vld [vmem:[#allocation7 + $0x38] sm:$0xf0]  ;;  %v2094_v17 = vor.u32 %v2749_v9, %v2091_v11 }
  0x32   :  { %363 = vmatpush.bf16.msra.mxu0 %v2122_v56  ;;  %v2098_v18 = vor.u32 %v2752_v13, %v2097_v12  ;;  %v2073_v19 = vld [vmem:[#allocation7] sm:$0xf]  ;;  %v2747_v20 = vld [vmem:[#allocation7 + $0xc] sm:$0xf0]  ;;  %v2745_v21 = vld [vmem:[#allocation7 + $0x4] sm:$0xf]  ;;  %v2102_v22 = vor.u32 %v2750_v14, %v2099_v15 }
  0x33   :  { %382 = vmatpush.bf16.msra.mxu1 %v2126_v57  ;;  %v2075_v23 = vld [vmem:[#allocation7 + $0x10] sm:$0xf0]  ;;  %v2081_v24 = vld [vmem:[#allocation7 + $0x8] sm:$0xf]  ;;  %v2748_v25 = vld [vmem:[#allocation7 + $0x14] sm:$0xf0]  ;;  %v2074_v28 = vor.u32 %v2747_v20, %v2073_v19 }
  0x34   :  { %401 = vmatpush.bf16.msra.mxu2 %v2130_v58  ;;  %420 = vmatpush.bf16.msra.mxu3 %v2134_v62  ;;  %v2746_v26 = vld [vmem:[#allocation7 + $0xc] sm:$0xf]  ;;  %v2083_v27 = vld [vmem:[#allocation7 + $0x18] sm:$0xf0]  ;;  %v2078_v29 = vor.u32 %v2745_v21, %v2075_v23  ;;  %v2082_v30 = vor.u32 %v2748_v25, %v2081_v24  ;;  %v2783_v35 = vld [vmem:[#allocation10 + $0x30] sm:$0xff]  ;;  %v3147_v3 = vmov 0  }
  0x35   :  { %v2086_v31 = vor.u32 %v2746_v26, %v2083_v27  ;;  %v2743_v32 = vld [vmem:[#allocation2] sm:$0xff]  ;;  %v2784_v33 = vld [vmem:[#allocation10 + $0x38] sm:$0xff]  ;;  %v2781_v44 = vld [vmem:[#allocation10 + $0x20] sm:$0xff]  ;;  %vm1693_vm0 = vcmask 1043456   ;;  %vm1694_vm1 = vsmask.f32 3328 }
  0x36   :  { %364 = vmatpush.bf16.msra.mxu0 %v2106_v4  ;;  %v2800_v34 = vld [vmem:[#allocation10 + $0xb8] sm:$0xff]  ;;  %v2799_v37 = vld [vmem:[#allocation10 + $0xb0] sm:$0xff]  ;;  %v2782_v40 = vld [vmem:[#allocation10 + $0x28] sm:$0xff]  ;;  %vm1666_vm3 = vcmask 1040384   ;;  %vm1667_vm4 = vsmask.f32 256 }
  0x37   :  { %383 = vmatpush.bf16.msra.mxu1 %v2110_v5  ;;  %v2808_v36 = vld [vmem:[#allocation10 + $0xf8] sm:$0xff]  ;;  %v2791_v39 = vld [vmem:[#allocation10 + $0x70] sm:$0xff]  ;;  %v2798_v42 = vld [vmem:[#allocation10 + $0xa8] sm:$0xff]  ;;  %s3148_s23 = smov [#allocation14]   ;;  %s2047_s26 = sshll.u32 %s3294_s9, 4  ;;  %s2048_s26 = int_to_ptr.hbm [resolvable:$true] %s2047_s26 }
  0x38   :  { %402 = vmatpush.bf16.msra.mxu2 %v2114_v6  ;;  %421 = vmatpush.bf16.msra.mxu3 %v2118_v10  ;;  %v2792_v38 = vld [vmem:[#allocation10 + $0x78] sm:$0xff]  ;;  %v2807_v41 = vld [vmem:[#allocation10 + $0xf0] sm:$0xff]  ;;  %v2790_v43 = vld [vmem:[#allocation10 + $0x68] sm:$0xff]  ;;  %s2045_s24 = sshll.u32 %s3148_s23, 4  ;;  %s3150_s27 = smov 8   ;;  %s2046_s24 = int_to_ptr.vmem [resolvable:$true] %s2045_s24 }
  0x39   :  { %v2806_v45 = vld [vmem:[#allocation10 + $0xe8] sm:$0xff]  ;;  %v2797_v46 = vld [vmem:[#allocation10 + $0xa0] sm:$0xff]  ;;  %v2780_v48 = vld [vmem:[#allocation10 + $0x18] sm:$0xff] }
  0x3a   :  { %365 = vmatpush.bf16.msra.mxu0 %v2090_v16  ;;  %v2789_v47 = vld [vmem:[#allocation10 + $0x60] sm:$0xff]  ;;  %v2744_v50 = vld [vmem:[#allocation2 + $0x8] sm:$0xff]  ;;  %v2778_v55 = vld [vmem:[#allocation10 + $0x8] sm:$0xff] }
  0x3b   :  { %384 = vmatpush.bf16.msra.mxu1 %v2094_v17  ;;  %v2805_v49 = vld [vmem:[#allocation10 + $0xe0] sm:$0xff]  ;;  %v2796_v51 = vld [vmem:[#allocation10 + $0x98] sm:$0xff]  ;;  %v2779_v52 = vld [vmem:[#allocation10 + $0x10] sm:$0xff] }
  0x3c   :  { %403 = vmatpush.bf16.msra.mxu2 %v2098_v18  ;;  %422 = vmatpush.bf16.msra.mxu3 %v2102_v22  ;;  %v2804_v53 = vld [vmem:[#allocation10 + $0xd8] sm:$0xff]  ;;  %v2795_v54 = vld [vmem:[#allocation10 + $0x90] sm:$0xff]  ;;  %v2794_v57 = vld [vmem:[#allocation10 + $0x88] sm:$0xff] }
  0x3d   :  { %v2803_v56 = vld [vmem:[#allocation10 + $0xd0] sm:$0xff]  ;;  %v2777_v58 = vld [vmem:[#allocation10] sm:$0xff]  ;;  %v2802_v59 = vld [vmem:[#allocation10 + $0xc8] sm:$0xff] }
  0x3e   :  { %366 = vmatpush.bf16.msra.mxu0 %v2074_v28  ;;  %v2793_v60 = vld [vmem:[#allocation10 + $0x80] sm:$0xff]  ;;  %v2816_v61 = vld [vmem:[#allocation10 + $0x138] sm:$0xff]  ;;  %v2815_v1 = vld [vmem:[#allocation10 + $0x130] sm:$0xff] }
  0x3f   :  { %385 = vmatpush.bf16.msra.mxu1 %v2078_v29  ;;  %v2832_v62 = vld [vmem:[#allocation10 + $0x1b8] sm:$0xff]  ;;  %v2801_v63 = vld [vmem:[#allocation10 + $0xc0] sm:$0xff]  ;;  %v2831_v2 = vld [vmem:[#allocation10 + $0x1b0] sm:$0xff] }
  0x40   :  { %404 = vmatpush.bf16.msra.mxu2 %v2082_v30  ;;  %423 = vmatpush.bf16.msra.mxu3 %v2086_v31  ;;  %v2840_v0 = vld [vmem:[#allocation10 + $0x1f8] sm:$0xff]  ;;  %v2839_v4 = vld [vmem:[#allocation10 + $0x1f0] sm:$0xff]  ;;  %v2814_v5 = vld [vmem:[#allocation10 + $0x128] sm:$0xff] }
  0x41   :  { %367 = vmatmul.bf16.vlgmr.msra.gmra.mxu0 %v2743_v32  ;;  %v2830_v6 = vld [vmem:[#allocation10 + $0x1a8] sm:$0xff]  ;;  %v2788_v8 = vld [vmem:[#allocation10 + $0x58] sm:$0xff]  ;;  %v2813_v9 = vld [vmem:[#allocation10 + $0x120] sm:$0xff] }
  0x42   :  { %647 = vmatpush.bf16.msrb.mxu0 %v2784_v33  ;;  %386 = vmatmul.bf16.vlgmr.msra.gmra.mxu1 %v2743_v32  ;;  %v2838_v7 = vld [vmem:[#allocation10 + $0x1e8] sm:$0xff]  ;;  %v2829_v10 = vld [vmem:[#allocation10 + $0x1a0] sm:$0xff]  ;;  %v2787_v12 = vld [vmem:[#allocation10 + $0x50] sm:$0xff] }
  0x43   :  { %405 = vmatmul.bf16.vlgmr.msra.gmra.mxu2 %v2743_v32  ;;  %424 = vmatmul.bf16.vlgmr.msra.gmra.mxu3 %v2743_v32  ;;  %v2837_v11 = vld [vmem:[#allocation10 + $0x1e0] sm:$0xff]  ;;  %v2812_v13 = vld [vmem:[#allocation10 + $0x118] sm:$0xff]  ;;  %v2786_v16 = vld [vmem:[#allocation10 + $0x48] sm:$0xff] }
  0x44   :  { %685 = vmatpush.bf16.msrb.mxu2 %v2800_v34  ;;  %666 = vmatpush.bf16.msrb.mxu1 %v2792_v38  ;;  %v2828_v14 = vld [vmem:[#allocation10 + $0x198] sm:$0xff]  ;;  %v2811_v17 = vld [vmem:[#allocation10 + $0x110] sm:$0xff]  ;;  %v2785_v20 = vld [vmem:[#allocation10 + $0x40] sm:$0xff] }
  0x45   :  { %913 = vmatpush.bf16.msrb.mxu3 %v2808_v36  ;;  %v2836_v15 = vld [vmem:[#allocation10 + $0x1d8] sm:$0xff]  ;;  %v2827_v18 = vld [vmem:[#allocation10 + $0x190] sm:$0xff]  ;;  %v2810_v21 = vld [vmem:[#allocation10 + $0x108] sm:$0xff] }
  0x46   :  { %648 = vmatpush.bf16.msrb.mxu0 %v2783_v35  ;;  %v2835_v19 = vld [vmem:[#allocation10 + $0x1d0] sm:$0xff]  ;;  %v2826_v22 = vld [vmem:[#allocation10 + $0x188] sm:$0xff]  ;;  %v2824_v24 = vld [vmem:[#allocation10 + $0x178] sm:$0xff] }
  0x47   :  { %v2834_v23 = vld [vmem:[#allocation10 + $0x1c8] sm:$0xff]  ;;  %v2809_v25 = vld [vmem:[#allocation10 + $0x100] sm:$0xff]  ;;  %v2823_v28 = vld [vmem:[#allocation10 + $0x170] sm:$0xff] }
  0x48   :  { %686 = vmatpush.bf16.msrb.mxu2 %v2799_v37  ;;  %667 = vmatpush.bf16.msrb.mxu1 %v2791_v39  ;;  %v2825_v26 = vld [vmem:[#allocation10 + $0x180] sm:$0xff]  ;;  %v2848_v29 = vld [vmem:[#allocation10 + $0x238] sm:$0xff]  ;;  %v2822_v30 = vld [vmem:[#allocation10 + $0x168] sm:$0xff] }
  0x49   :  { %914 = vmatpush.bf16.msrb.mxu3 %v2807_v41  ;;  %v2833_v27 = vld [vmem:[#allocation10 + $0x1c0] sm:$0xff]  ;;  %v2847_v31 = vld [vmem:[#allocation10 + $0x230] sm:$0xff]  ;;  %v177_v33 = vld [vmem:[#allocation8] sm:$0xf] }
  0x4a   :  { %649 = vmatpush.bf16.msrb.mxu0 %v2782_v40  ;;  %v2821_v32 = vld [vmem:[#allocation10 + $0x160] sm:$0xff]  ;;  %v2846_v35 = vld [vmem:[#allocation10 + $0x228] sm:$0xff]  ;;  %v3232_v37 = vperm.slane %v177_v33, 0  ;;  %v3234_v38 = vperm.slane %v177_v33, 1  ;;  %v2820_v39 = vld [vmem:[#allocation10 + $0x158] sm:$0xff] }
  0x4b   :  { %v2845_v40 = vld [vmem:[#allocation10 + $0x220] sm:$0xff]  ;;  %v2819_v41 = vld [vmem:[#allocation10 + $0x150] sm:$0xff]  ;;  %vm1695_vm2 = vmand %vm1693_vm0, %vm1694_vm1 }
  0x4c   :  { %687 = vmatpush.bf16.msrb.mxu2 %v2798_v42  ;;  %668 = vmatpush.bf16.msrb.mxu1 %v2790_v43  ;;  %vm1668_vm5 = vmand %vm1666_vm3, %vm1667_vm4 }
  0x4d   :  { %915 = vmatpush.bf16.msrb.mxu3 %v2806_v45 }
  0x4e   :  { %650 = vmatpush.bf16.msrb.mxu0 %v2781_v44 }
  0x50   :  { %688 = vmatpush.bf16.msrb.mxu2 %v2797_v46  ;;  %669 = vmatpush.bf16.msrb.mxu1 %v2789_v47  ;;  %v2844_v47 = vld [vmem:[#allocation10 + $0x218] sm:$0xff] }
  0x51   :  { %916 = vmatpush.bf16.msrb.mxu3 %v2805_v49  ;;  %372 = vmatmul.bf16.gmra.mxu0 %v2744_v50  ;;  %v3240_v49 = vperm.slane %v177_v33, 3 }
  0x52   :  { %651 = vmatpush.bf16.msrb.mxu0 %v2780_v48  ;;  %391 = vmatmul.bf16.gmra.mxu1 %v2744_v50  ;;  %v3238_v48 = vperm.slane %v177_v33, 2 }
  0x53   :  { %410 = vmatmul.bf16.gmra.mxu2 %v2744_v50  ;;  %429 = vmatmul.bf16.gmra.mxu3 %v2744_v50 }
  0x54   :  { %689 = vmatpush.bf16.msrb.mxu2 %v2796_v51  ;;  %670 = vmatpush.bf16.msrb.mxu1 %v2788_v8 }
  0x55   :  { %917 = vmatpush.bf16.msrb.mxu3 %v2804_v53 }
  0x56   :  { %652 = vmatpush.bf16.msrb.mxu0 %v2779_v52  ;;  %v2818_v52 = vld [vmem:[#allocation10 + $0x148] sm:$0xff] }
  0x58   :  { %690 = vmatpush.bf16.msrb.mxu2 %v2795_v54  ;;  %671 = vmatpush.bf16.msrb.mxu1 %v2787_v12  ;;  %v2841_v12 = vld [vmem:[#allocation10 + $0x200] sm:$0xff] }
  0x59   :  { %918 = vmatpush.bf16.msrb.mxu3 %v2803_v56 }
  0x5a   :  { %653 = vmatpush.bf16.msrb.mxu0 %v2778_v55  ;;  %v2843_v55 = vld [vmem:[#allocation10 + $0x210] sm:$0xff] }
  0x5c   :  { %691 = vmatpush.bf16.msrb.mxu2 %v2794_v57  ;;  %672 = vmatpush.bf16.msrb.mxu1 %v2786_v16  ;;  %v2817_v57 = vld [vmem:[#allocation10 + $0x140] sm:$0xff] }
  0x5d   :  { %919 = vmatpush.bf16.msrb.mxu3 %v2802_v59 }
  0x5e   :  { %654 = vmatpush.bf16.msrb.mxu0 %v2777_v58 }
  0x60   :  { %692 = vmatpush.bf16.msrb.mxu2 %v2793_v60  ;;  %673 = vmatpush.bf16.msrb.mxu1 %v2785_v20 }
  0x61   :  { %920 = vmatpush.bf16.msrb.mxu3 %v2801_v63  ;;  %655 = vmatmul.bf16.vlgmr.msrb.gmra.mxu0 %v3147_v3 }
  0x62   :  { %932 = vmatpush.bf16.msra.mxu0 %v2816_v61 }
  0x63   :  { %693 = vmatmul.bf16.vlgmr.msrb.gmra.mxu2 %v3147_v3 }
  0x64   :  { %1175 = vmatpush.bf16.msra.mxu2 %v2832_v62  ;;  %921 = vmatmul.bf16.vlgmr.msrb.gmra.mxu3 %v3147_v3 }
  0x65   :  { %1194 = vmatpush.bf16.msra.mxu3 %v2840_v0  ;;  %951 = vmatpush.bf16.msra.mxu1 %v2824_v24  ;;  %v2842_v0 = vld [vmem:[#allocation10 + $0x208] sm:$0xff] }
  0x66   :  { %933 = vmatpush.bf16.msra.mxu0 %v2815_v1 }
  0x68   :  { %1176 = vmatpush.bf16.msra.mxu2 %v2831_v2 }
  0x69   :  { %1195 = vmatpush.bf16.msra.mxu3 %v2839_v4  ;;  %952 = vmatpush.bf16.msra.mxu1 %v2823_v28  ;;  %v2854_v28 = vld [vmem:[#allocation11 + $0x28] sm:$0xff] }
  0x6a   :  { %934 = vmatpush.bf16.msra.mxu0 %v2814_v5 }
  0x6c   :  { %1177 = vmatpush.bf16.msra.mxu2 %v2830_v6 }
  0x6d   :  { %1196 = vmatpush.bf16.msra.mxu3 %v2838_v7  ;;  %953 = vmatpush.bf16.msra.mxu1 %v2822_v30 }
  0x6e   :  { %935 = vmatpush.bf16.msra.mxu0 %v2813_v9 }
  0x70   :  { %1178 = vmatpush.bf16.msra.mxu2 %v2829_v10 }
  0x71   :  { %660 = vmatmul.bf16.gmra.mxu0 %v3147_v3  ;;  %1197 = vmatpush.bf16.msra.mxu3 %v2837_v11  ;;  %v2856_v11 = vld [vmem:[#allocation11 + $0x38] sm:$0xff] }
  0x72   :  { %936 = vmatpush.bf16.msra.mxu0 %v2812_v13  ;;  %954 = vmatpush.bf16.msra.mxu1 %v2821_v32  ;;  %v2853_v32 = vld [vmem:[#allocation11 + $0x20] sm:$0xff] }
  0x73   :  { %698 = vmatmul.bf16.gmra.mxu2 %v3147_v3 }
  0x74   :  { %926 = vmatmul.bf16.gmra.mxu3 %v3147_v3  ;;  %1179 = vmatpush.bf16.msra.mxu2 %v2828_v14  ;;  %v2855_v14 = vld [vmem:[#allocation11 + $0x30] sm:$0xff] }
  0x75   :  { %1198 = vmatpush.bf16.msra.mxu3 %v2836_v15 }
  0x76   :  { %937 = vmatpush.bf16.msra.mxu0 %v2811_v17  ;;  %955 = vmatpush.bf16.msra.mxu1 %v2820_v39 }
  0x78   :  { %1180 = vmatpush.bf16.msra.mxu2 %v2827_v18 }
  0x79   :  { %1199 = vmatpush.bf16.msra.mxu3 %v2835_v19 }
  0x7a   :  { %938 = vmatpush.bf16.msra.mxu0 %v2810_v21  ;;  %956 = vmatpush.bf16.msra.mxu1 %v2819_v41 }
  0x7c   :  { %1181 = vmatpush.bf16.msra.mxu2 %v2826_v22 }
  0x7d   :  { %1200 = vmatpush.bf16.msra.mxu3 %v2834_v23 }
  0x7e   :  { %939 = vmatpush.bf16.msra.mxu0 %v2809_v25  ;;  %957 = vmatpush.bf16.msra.mxu1 %v2818_v52 }
  0x80   :  { %1182 = vmatpush.bf16.msra.mxu2 %v2825_v26 }
  0x81   :  { %1201 = vmatpush.bf16.msra.mxu3 %v2833_v27 }
  0x82   :  { %1213 = vmatpush.bf16.msrb.mxu0 %v2848_v29  ;;  %958 = vmatpush.bf16.msra.mxu1 %v2817_v57  ;;  %v2849_v57 = vld [vmem:[#allocation11] sm:$0xff] }
  0x83   :  { %1183 = vmatmul.bf16.vlgmr.msra.gmra.mxu2 %v3147_v3 }
  0x86   :  { %1214 = vmatpush.bf16.msrb.mxu0 %v2847_v31 }
  0x8a   :  { %1215 = vmatpush.bf16.msrb.mxu0 %v2846_v35 }
  0x8e   :  { %1216 = vmatpush.bf16.msrb.mxu0 %v2845_v40 }
  0x92   :  { %1217 = vmatpush.bf16.msrb.mxu0 %v2844_v47 }
  0x93   :  { %1188 = vmatmul.bf16.gmra.mxu2 %v3147_v3 }
  0x96   :  { %1218 = vmatpush.bf16.msrb.mxu0 %v2843_v55 }
  0x9a   :  { %1219 = vmatpush.bf16.msrb.mxu0 %v2842_v0 }
  0x9e   :  { %1220 = vmatpush.bf16.msrb.mxu0 %v2841_v12 }
  0xbe   :  { %v368_v34 = vpop.f32.mrf.mxu0 }
  0xbf   :  { %v387_v36 = vpop.f32.mrf.mxu1  ;;  %v369_v42 = vadd.f32 %v368_v34, %v3232_v37 }
  0xc0   :  { %v388_v43 = vadd.f32 %v387_v36, %v3234_v38 }
  0xc2   :  { %v435_v53 = vpack.c.bf16 %v388_v43, %v369_v42 }
  0xc4   :  { %v447_v60 = vunpack.c.h.b16 %v435_v53  ;;  %v1236_v61 = vunpack.c.l.b16 %v435_v53 }
  0xc6   :  { %v406_v44 = vpop.f32.mrf.mxu2  ;;  %v425_v45 = vpop.f32.mrf.mxu3 }
  0xc7   :  { %v370_v46 = vpop.f32.mrf.mxu0  ;;  %v389_v51 = vpop.f32.mrf.mxu1  ;;  %v407_v58 = vadd.f32 %v406_v44, %v3238_v48  ;;  %v426_v59 = vadd.f32 %v425_v45, %v3240_v49 }
  0xc8   :  { %v371_v50 = vadd.f32 %v370_v46, %v3232_v37  ;;  %v390_v54 = vadd.f32 %v389_v51, %v3234_v38  ;;  %v2852_v46 = vld [vmem:[#allocation11 + $0x18] sm:$0xff] }
  0xc9   :  { %v436_v8 = vpack.c.bf16 %v426_v59, %v407_v58  ;;  %v2863_v58 = vld [vmem:[#allocation11 + $0x70] sm:$0xff]  ;;  %v2862_v59 = vld [vmem:[#allocation11 + $0x68] sm:$0xff] }
  0xca   :  { %v437_v56 = vpack.c.bf16 %v390_v54, %v371_v50  ;;  %v2851_v50 = vld [vmem:[#allocation11 + $0x10] sm:$0xff] }
  0xcb   :  { %v712_v15 = vunpack.c.l.b16 %v436_v8  ;;  %v974_v16 = vunpack.c.h.b16 %v436_v8  ;;  %v2880_v8 = vld [vmem:[#allocation11 + $0xf8] sm:$0xff] }
  0xcc   :  { %v448_v62 = vunpack.c.h.b16 %v437_v56  ;;  %v1237_v63 = vunpack.c.l.b16 %v437_v56 }
  0xce   :  { %v408_v1 = vpop.f32.mrf.mxu2  ;;  %v3247_v2 = vpack.c.b16 %v1237_v63, %v1236_v61  ;;  %v427_v5 = vpop.f32.mrf.mxu3  ;;  %v451_v7 = vpack.c.b16 %v448_v62, %v447_v60  ;;  %v2861_v60 = vld [vmem:[#allocation11 + $0x60] sm:$0xff]  ;;  %v2860_v62 = vld [vmem:[#allocation11 + $0x58] sm:$0xff]  ;;  %v2859_v63 = vld [vmem:[#allocation11 + $0x50] sm:$0xff] }
  0xcf   :  { %v409_v4 = vadd.f32 %v408_v1, %v3238_v48  ;;  %v373_v6 = vpop.f32.mrf.mxu0  ;;  %v428_v9 = vadd.f32 %v427_v5, %v3240_v49  ;;  %v392_v10 = vpop.f32.mrf.mxu1  ;;  %v2858_v1 = vld [vmem:[#allocation11 + $0x48] sm:$0xff]  ;;  %v2872_v5 = vld [vmem:[#allocation11 + $0xb8] sm:$0xff] }
  0xd0   :  { %674 = vmatmul.bf16.vlgmr.msrb.gmra.mxu1 %v451_v7  ;;  %v374_v19 = vadd.f32 %v373_v6, %v3232_v37  ;;  %v393_v20 = vadd.f32 %v392_v10, %v3234_v38  ;;  %1578 = vmatpush.bf16.msrb.mxu3 %v2872_v5  ;;  %v2879_v10 = vld [vmem:[#allocation11 + $0xf0] sm:$0xff] }
  0xd1   :  { %v438_v13 = vpack.c.bf16 %v428_v9, %v409_v4  ;;  %1540 = vmatpush.bf16.msrb.mxu1 %v2856_v11  ;;  %v2857_v4 = vld [vmem:[#allocation11 + $0x40] sm:$0xff]  ;;  %v2870_v9 = vld [vmem:[#allocation11 + $0xa8] sm:$0xff] }
  0xd2   :  { %v439_v29 = vpack.c.bf16 %v393_v20, %v374_v19  ;;  %v2869_v11 = vld [vmem:[#allocation11 + $0xa0] sm:$0xff]  ;;  %v2867_v20 = vld [vmem:[#allocation11 + $0x90] sm:$0xff] }
  0xd3   :  { %v713_v17 = vunpack.c.l.b16 %v438_v13  ;;  %v975_v18 = vunpack.c.h.b16 %v438_v13  ;;  %v2877_v19 = vld [vmem:[#allocation11 + $0xe0] sm:$0xff] }
  0xd4   :  { %v449_v35 = vunpack.c.h.b16 %v439_v29  ;;  %v1238_v39 = vunpack.c.l.b16 %v439_v29 }
  0xd5   :  { %v716_v21 = vpack.c.b16 %v713_v17, %v712_v15  ;;  %v978_v22 = vpack.c.b16 %v975_v18, %v974_v16  ;;  %1541 = vmatpush.bf16.msrb.mxu1 %v2855_v14  ;;  %v2878_v15 = vld [vmem:[#allocation11 + $0xe8] sm:$0xff]  ;;  %v2868_v17 = vld [vmem:[#allocation11 + $0x98] sm:$0xff] }
  0xd6   :  { %v411_v23 = vpop.f32.mrf.mxu2  ;;  %v430_v24 = vpop.f32.mrf.mxu3 }
  0xd7   :  { %v375_v25 = vpop.f32.mrf.mxu0  ;;  %940 = vmatmul.bf16.vlgmr.msra.gmra.mxu0 %v716_v21  ;;  %1202 = vmatmul.bf16.vlgmr.msra.gmra.mxu3 %v978_v22  ;;  %v394_v27 = vpop.f32.mrf.mxu1  ;;  %v412_v33 = vadd.f32 %v411_v23, %v3238_v48  ;;  %v431_v34 = vadd.f32 %v430_v24, %v3240_v49  ;;  %v2876_v23 = vld [vmem:[#allocation11 + $0xd8] sm:$0xff] }
  0xd8   :  { %v376_v26 = vadd.f32 %v375_v25, %v3232_v37  ;;  %v395_v30 = vadd.f32 %v394_v27, %v3234_v38  ;;  %1597 = vmatpush.bf16.msra.mxu0 %v2880_v8 }
  0xd9   :  { %1542 = vmatpush.bf16.msrb.mxu1 %v2854_v28  ;;  %v440_v45 = vpack.c.bf16 %v431_v34, %v412_v33  ;;  %v2866_v28 = vld [vmem:[#allocation11 + $0x88] sm:$0xff]  ;;  %v2865_v33 = vld [vmem:[#allocation11 + $0x80] sm:$0xff] }
  0xda   :  { %v441_v31 = vpack.c.bf16 %v395_v30, %v376_v26 }
  0xdb   :  { %v714_v51 = vunpack.c.l.b16 %v440_v45  ;;  %v976_v53 = vunpack.c.h.b16 %v440_v45 }
  0xdc   :  { %v450_v36 = vunpack.c.h.b16 %v441_v31  ;;  %v1239_v40 = vunpack.c.l.b16 %v441_v31  ;;  %1598 = vmatpush.bf16.msra.mxu0 %v2879_v10  ;;  %v2875_v31 = vld [vmem:[#allocation11 + $0xd0] sm:$0xff] }
  0xdd   :  { %1543 = vmatpush.bf16.msrb.mxu1 %v2853_v32 }
  0xde   :  { %v413_v41 = vpop.f32.mrf.mxu2  ;;  %v432_v37 = vpop.f32.mrf.mxu3  ;;  %v452_v43 = vpack.c.b16 %v450_v36, %v449_v35  ;;  %v1241_v44 = vpack.c.b16 %v1239_v40, %v1238_v39  ;;  %v2874_v39 = vld [vmem:[#allocation11 + $0xc8] sm:$0xff] }
  0xdf   :  { %v414_v42 = vadd.f32 %v413_v41, %v3238_v48  ;;  %v433_v38 = vadd.f32 %v432_v37, %v3240_v49  ;;  %v2850_v48 = vld [vmem:[#allocation11 + $0x8] sm:$0xff]  ;;  %v2864_v49 = vld [vmem:[#allocation11 + $0x78] sm:$0xff]  ;;  %v656_v61 = vpop.f32.mrf.mxu0 }
  0xe0   :  { %679 = vmatmul.bf16.gmra.mxu1 %v452_v43  ;;  %1559 = vmatpush.bf16.msrb.mxu2 %v2864_v49 }
  0xe1   :  { %v442_v47 = vpack.c.bf16 %v433_v38, %v414_v42  ;;  %1544 = vmatpush.bf16.msrb.mxu1 %v2852_v46  ;;  %1599 = vmatpush.bf16.msra.mxu0 %v2878_v15 }
  0xe3   :  { %v715_v52 = vunpack.c.l.b16 %v442_v47  ;;  %v977_v54 = vunpack.c.h.b16 %v442_v47 }
  0xe4   :  { %1560 = vmatpush.bf16.msrb.mxu2 %v2863_v58 }
  0xe5   :  { %v717_v55 = vpack.c.b16 %v715_v52, %v714_v51  ;;  %v979_v56 = vpack.c.b16 %v977_v54, %v976_v53  ;;  %1545 = vmatpush.bf16.msrb.mxu1 %v2851_v50  ;;  %1600 = vmatpush.bf16.msra.mxu0 %v2877_v19 }
  0xe6   :  { %v694_v6 = vpop.f32.mrf.mxu2 }
  0xe7   :  { %945 = vmatmul.bf16.gmra.mxu0 %v717_v55  ;;  %1207 = vmatmul.bf16.gmra.mxu3 %v979_v56  ;;  %v658_v0 = vpop.f32.mrf.mxu0 }
  0xe8   :  { %1561 = vmatpush.bf16.msrb.mxu2 %v2862_v59 }
  0xe9   :  { %1546 = vmatpush.bf16.msrb.mxu1 %v2850_v48  ;;  %1601 = vmatpush.bf16.msra.mxu0 %v2876_v23 }
  0xec   :  { %1562 = vmatpush.bf16.msrb.mxu2 %v2861_v60 }
  0xed   :  { %1547 = vmatpush.bf16.msrb.mxu1 %v2849_v57  ;;  %1602 = vmatpush.bf16.msra.mxu0 %v2875_v31 }
  0xee   :  { %v696_v12 = vpop.f32.mrf.mxu2 }
  0xef   :  { %v661_v7 = vpop.f32.mrf.mxu0 }
  0xf0   :  { %959 = vmatmul.bf16.vlgmr.msra.gmra.mxu1 %v3147_v3  ;;  %1563 = vmatpush.bf16.msrb.mxu2 %v2860_v62 }
  0xf1   :  { %1603 = vmatpush.bf16.msra.mxu0 %v2874_v39 }
  0xf4   :  { %1564 = vmatpush.bf16.msrb.mxu2 %v2859_v63 }
  0xf6   :  { %v699_v24 = vpop.f32.mrf.mxu2 }
  0xf7   :  { %1221 = vmatmul.bf16.vlgmr.msrb.gmra.mxu0 %v3147_v3  ;;  %v663_v14 = vpop.f32.mrf.mxu0 }
  0xf8   :  { %1565 = vmatpush.bf16.msrb.mxu2 %v2858_v1 }
  0xfc   :  { %1566 = vmatpush.bf16.msrb.mxu2 %v2857_v4 }
  0xfe   :  { %v701_v42 = vpop.f32.mrf.mxu2 }
 0x100   :  { %964 = vmatmul.bf16.gmra.mxu1 %v3147_v3 }
 0x106   :  { %v1184_v52 = vpop.f32.mrf.mxu2 }
 0x107   :  { %1226 = vmatmul.bf16.gmra.mxu0 %v3147_v3  ;;  %v3264_v3 = vpop.f32.mrf.mxu3 }
 0x10e   :  { %v1186_v60 = vpop.f32.mrf.mxu2 }
 0x10f   :  { %v924_v13 = vpop.f32.mrf.mxu3 }
 0x110   :  { %1548 = vmatmul.bf16.vlgmr.msrb.gmra.mxu1 %v3247_v2  ;;  %v2871_v2 = vld [vmem:[#allocation11 + $0xb0] sm:$0xff] }
 0x111   :  { %1579 = vmatpush.bf16.msrb.mxu3 %v2871_v2 }
 0x115   :  { %1580 = vmatpush.bf16.msrb.mxu3 %v2870_v9 }
 0x116   :  { %v1189_v15 = vpop.f32.mrf.mxu2 }
 0x117   :  { %v3266_v26 = vpop.f32.mrf.mxu3 }
 0x119   :  { %1581 = vmatpush.bf16.msrb.mxu3 %v2869_v11 }
 0x11d   :  { %1582 = vmatpush.bf16.msrb.mxu3 %v2868_v17 }
 0x11f   :  { %v929_v37 = vpop.f32.mrf.mxu3 }
 0x120   :  { %1553 = vmatmul.bf16.gmra.mxu1 %v1241_v44  ;;  %v2873_v44 = vld [vmem:[#allocation11 + $0xc0] sm:$0xff] }
 0x121   :  { %1583 = vmatpush.bf16.msrb.mxu3 %v2867_v20  ;;  %1604 = vmatpush.bf16.msra.mxu0 %v2873_v44  ;;  %v2896_v44 = vld [vmem:[#allocation13 + $0x78] sm:$0xff] }
 0x122   :  { %1781 = vmatpush.bf16.msra.mxu1 %v2896_v44 }
 0x125   :  { %1584 = vmatpush.bf16.msrb.mxu3 %v2866_v28 }
 0x129   :  { %1585 = vmatpush.bf16.msrb.mxu3 %v2865_v33 }
 0x14d   :  { %v675_v16 = vpop.f32.mrf.mxu1 }
 0x14e   :  { %v676_v18 = vadd.f32 %v675_v16, %v656_v61 }
 0x150   :  { %v695_v21 = vadd.f32 %v694_v6, %v676_v18 }
 0x152   :  { %v704_v29 = vpack.c.bf16 %v695_v21, %v695_v21 }
 0x154   :  { %v941_v22 = vpop.f32.mrf.mxu0  ;;  %v1248_v34 = vunpack.c.l.b16 %v704_v29  ;;  %v1191_v29 = vpop.f32.mrf.mxu2 }
 0x155   :  { %v677_v25 = vpop.f32.mrf.mxu1  ;;  %v942_v58 = vadd.f32 %v941_v22, %v3264_v3 }
 0x156   :  { %v678_v27 = vadd.f32 %v677_v25, %v658_v0 }
 0x158   :  { %v697_v30 = vadd.f32 %v696_v12, %v678_v27 }
 0x15a   :  { %v705_v32 = vpack.c.bf16 %v697_v30, %v697_v30  ;;  %v1203_v53 = vpop.f32.mrf.mxu3 }
 0x15b   :  { %v1204_v5 = vadd.f32 %v1203_v53, %v1184_v52  ;;  %v2911_v52 = vld [vmem:[#allocation13 + $0xf0] sm:$0xff]  ;;  %v2892_v53 = vld [vmem:[#allocation13 + $0x58] sm:$0xff] }
 0x15c   :  { %v1249_v35 = vunpack.c.l.b16 %v705_v32  ;;  %v943_v36 = vpop.f32.mrf.mxu0 }
 0x15d   :  { %v680_v40 = vpop.f32.mrf.mxu1  ;;  %v944_v61 = vadd.f32 %v943_v36, %v924_v13 }
 0x15e   :  { %v1252_v41 = vpack.c.b16 %v1249_v35, %v1248_v34  ;;  %v681_v43 = vadd.f32 %v680_v40, %v661_v7 }
 0x160   :  { %1567 = vmatmul.bf16.vlgmr.msrb.gmra.mxu2 %v1252_v41  ;;  %v700_v45 = vadd.f32 %v699_v24, %v681_v43 }
 0x162   :  { %v706_v50 = vpack.c.bf16 %v700_v45, %v700_v45  ;;  %v1205_v62 = vpop.f32.mrf.mxu3  ;;  %v2895_v45 = vld [vmem:[#allocation13 + $0x70] sm:$0xff] }
 0x163   :  { %v1206_v9 = vadd.f32 %v1205_v62, %v1186_v60  ;;  %1782 = vmatpush.bf16.msra.mxu1 %v2895_v45  ;;  %v2909_v60 = vld [vmem:[#allocation13 + $0xe0] sm:$0xff]  ;;  %v2890_v62 = vld [vmem:[#allocation13 + $0x48] sm:$0xff] }
 0x164   :  { %v946_v38 = vpop.f32.mrf.mxu0  ;;  %v1250_v56 = vunpack.c.l.b16 %v706_v50  ;;  %v2893_v50 = vld [vmem:[#allocation13 + $0x60] sm:$0xff] }
 0x165   :  { %v682_v46 = vpop.f32.mrf.mxu1  ;;  %v947_v17 = vadd.f32 %v946_v38, %v3266_v26  ;;  %v2894_v38 = vld [vmem:[#allocation13 + $0x68] sm:$0xff] }
 0x166   :  { %v683_v47 = vadd.f32 %v682_v46, %v663_v14  ;;  %v2904_v46 = vld [vmem:[#allocation13 + $0xb8] sm:$0xff] }
 0x167   :  { %1783 = vmatpush.bf16.msra.mxu1 %v2894_v38  ;;  %1930 = vmatpush.bf16.msra.mxu3 %v2904_v46 }
 0x168   :  { %v702_v51 = vadd.f32 %v701_v42, %v683_v47  ;;  %v2912_v47 = vld [vmem:[#allocation13 + $0xf8] sm:$0xff] }
 0x169   :  { %2017 = vmatpush.bf16.msrb.mxu0 %v2912_v47 }
 0x16a   :  { %v707_v54 = vpack.c.bf16 %v702_v51, %v702_v51  ;;  %v1208_v16 = vpop.f32.mrf.mxu3  ;;  %v2903_v51 = vld [vmem:[#allocation13 + $0xb0] sm:$0xff] }
 0x16b   :  { %v1209_v28 = vadd.f32 %v1208_v16, %v1189_v15  ;;  %1784 = vmatpush.bf16.msra.mxu1 %v2893_v50  ;;  %1931 = vmatpush.bf16.msra.mxu3 %v2903_v51  ;;  %v2898_v16 = vld [vmem:[#allocation13 + $0x88] sm:$0xff] }
 0x16c   :  { %v948_v55 = vpop.f32.mrf.mxu0  ;;  %v1251_v48 = vunpack.c.l.b16 %v707_v54  ;;  %v2902_v54 = vld [vmem:[#allocation13 + $0xa8] sm:$0xff] }
 0x16d   :  { %v960_v57 = vpop.f32.mrf.mxu1  ;;  %v949_v22 = vadd.f32 %v948_v55, %v929_v37  ;;  %2018 = vmatpush.bf16.msrb.mxu0 %v2911_v52 }
 0x16e   :  { %v1253_v49 = vpack.c.b16 %v1251_v48, %v1250_v56  ;;  %v961_v59 = vadd.f32 %v960_v57, %v942_v58  ;;  %v2888_v56 = vld [vmem:[#allocation13 + $0x38] sm:$0xff]  ;;  %v2910_v48 = vld [vmem:[#allocation13 + $0xe8] sm:$0xff]  ;;  %v2891_v57 = vld [vmem:[#allocation13 + $0x50] sm:$0xff] }
 0x16f   :  { %1785 = vmatpush.bf16.msra.mxu1 %v2892_v53  ;;  %1932 = vmatpush.bf16.msra.mxu3 %v2902_v54 }
 0x170   :  { %1572 = vmatmul.bf16.gmra.mxu2 %v1253_v49  ;;  %v970_v1 = vpack.c.bf16 %v961_v59, %v961_v59  ;;  %v2901_v49 = vld [vmem:[#allocation13 + $0xa0] sm:$0xff]  ;;  %v2887_v59 = vld [vmem:[#allocation13 + $0x30] sm:$0xff] }
 0x171   :  { %1849 = vmatpush.bf16.msra.mxu2 %v2888_v56  ;;  %2019 = vmatpush.bf16.msrb.mxu0 %v2910_v48 }
 0x172   :  { %v1260_v2 = vunpack.c.l.b16 %v970_v1  ;;  %v1210_v30 = vpop.f32.mrf.mxu3  ;;  %v2908_v1 = vld [vmem:[#allocation13 + $0xd8] sm:$0xff] }
 0x173   :  { %v1211_v35 = vadd.f32 %v1210_v30, %v1191_v29  ;;  %1786 = vmatpush.bf16.msra.mxu1 %v2891_v57  ;;  %1933 = vmatpush.bf16.msra.mxu3 %v2901_v49  ;;  %v2905_v29 = vld [vmem:[#allocation13 + $0xc0] sm:$0xff]  ;;  %v2931_v57 = vld [vmem:[#allocation5 + $0x1] ss:$0 sm:$0xff] }
 0x174   :  { %v1222_v63 = vpop.f32.mrf.mxu0 }
 0x175   :  { %v962_v0 = vpop.f32.mrf.mxu1  ;;  %v1223_v7 = vadd.f32 %v1222_v63, %v1204_v5  ;;  %v2900_v63 = vld [vmem:[#allocation13 + $0x98] sm:$0xff]  ;;  %1850 = vmatpush.bf16.msra.mxu2 %v2887_v59  ;;  %2020 = vmatpush.bf16.msrb.mxu0 %v2909_v60  ;;  %v2889_v5 = vld [vmem:[#allocation13 + $0x40] sm:$0xff] }
 0x176   :  { %v963_v4 = vadd.f32 %v962_v0, %v944_v61  ;;  %v3273_v61 = vld [vmem:[%s3291_s6] ss:$0 sm:$0xff] }
 0x177   :  { %v1232_v12 = vpack.c.bf16 %v1223_v7, %v1223_v7  ;;  %1787 = vmatpush.bf16.msra.mxu1 %v2890_v62  ;;  %1934 = vmatpush.bf16.msra.mxu3 %v2900_v63  ;;  %v2886_v0 = vld [vmem:[#allocation13 + $0x28] sm:$0xff] }
 0x178   :  { %v971_v6 = vpack.c.bf16 %v963_v4, %v963_v4 }
 0x179   :  { %v1272_v18 = vunpack.c.l.b16 %v1232_v12  ;;  %1851 = vmatpush.bf16.msra.mxu2 %v2886_v0  ;;  %2021 = vmatpush.bf16.msrb.mxu0 %v2908_v1  ;;  %v2907_v12 = vld [vmem:[#allocation13 + $0xd0] sm:$0xff] }
 0x17a   :  { %v1261_v8 = vunpack.c.l.b16 %v971_v6  ;;  %v2899_v6 = vld [vmem:[#allocation13 + $0x90] sm:$0xff] }
 0x17b   :  { %1788 = vmatpush.bf16.msra.mxu1 %v2889_v5  ;;  %1935 = vmatpush.bf16.msra.mxu3 %v2899_v6 }
 0x17c   :  { %v1264_v10 = vpack.c.b16 %v1261_v8, %v1260_v2  ;;  %v1224_v11 = vpop.f32.mrf.mxu0  ;;  %v141_v2 = vld [vmem:[#allocation2] sm:$0xff]  }
 0x17d   :  { %v1225_v14 = vadd.f32 %v1224_v11, %v1206_v9  ;;  %v965_v3 = vpop.f32.mrf.mxu1  ;;  %v2885_v11 = vld [vmem:[#allocation13 + $0x20] sm:$0xff]  ;;  %v1616_v15 = vunpack.c.l.bf16 %v141_v2  ;;  %2022 = vmatpush.bf16.msrb.mxu0 %v2907_v12 }
 0x17e   :  { %1586 = vmatmul.bf16.vlgmr.msrb.gmra.mxu3 %v1264_v10  ;;  %v966_v20 = vadd.f32 %v965_v3, %v947_v17  ;;  %1852 = vmatpush.bf16.msra.mxu2 %v2885_v11  ;;  %v2884_v17 = vld [vmem:[#allocation13 + $0x18] sm:$0xff] }
 0x17f   :  { %v1233_v13 = vpack.c.bf16 %v1225_v14, %v1225_v14  ;;  %1936 = vmatpush.bf16.msra.mxu3 %v2898_v16 }
 0x180   :  { %v972_v25 = vpack.c.bf16 %v966_v20, %v966_v20 }
 0x181   :  { %v1273_v19 = vunpack.c.l.b16 %v1233_v13 }
 0x182   :  { %v1262_v33 = vunpack.c.l.b16 %v972_v25  ;;  %1853 = vmatpush.bf16.msra.mxu2 %v2884_v17 }
 0x183   :  { %v1276_v21 = vpack.c.b16 %v1273_v19, %v1272_v18  ;;  %v2906_v18 = vld [vmem:[#allocation13 + $0xc8] sm:$0xff] }
 0x184   :  { %v1227_v23 = vpop.f32.mrf.mxu0  ;;  %2023 = vmatpush.bf16.msrb.mxu0 %v2906_v18 }
 0x185   :  { %1605 = vmatmul.bf16.vlgmr.msra.gmra.mxu0 %v1276_v21  ;;  %v967_v24 = vpop.f32.mrf.mxu1  ;;  %v1228_v32 = vadd.f32 %v1227_v23, %v1209_v28  ;;  %v2930_v21 = vld [vmem:[#allocation5] ss:$0 sm:$0xff]  ;;  %v2883_v28 = vld [vmem:[#allocation13 + $0x10] sm:$0xff] }
 0x186   :  { %v968_v27 = vadd.f32 %v967_v24, %v949_v22  ;;  %v2897_v22 = vld [vmem:[#allocation13 + $0x80] sm:$0xff]  ;;  %1854 = vmatpush.bf16.msra.mxu2 %v2883_v28 }
 0x187   :  { %v1234_v39 = vpack.c.bf16 %v1228_v32, %v1228_v32  ;;  %1937 = vmatpush.bf16.msra.mxu3 %v2897_v22 }
 0x188   :  { %v973_v31 = vpack.c.bf16 %v968_v27, %v968_v27  ;;  %2024 = vmatpush.bf16.msrb.mxu0 %v2905_v29 }
 0x189   :  { %v1274_v42 = vunpack.c.l.b16 %v1234_v39 }
 0x18a   :  { %v1263_v34 = vunpack.c.l.b16 %v973_v31 }
 0x18c   :  { %v1229_v36 = vpop.f32.mrf.mxu0  ;;  %v1265_v26 = vpack.c.b16 %v1263_v34, %v1262_v33  ;;  %v1617_v33 = vunpack.c.h.bf16 %v141_v2 }
 0x18d   :  { %v1230_v40 = vadd.f32 %v1229_v36, %v1211_v35  ;;  %v1549_v55 = vpop.f32.mrf.mxu1  ;;  %v2882_v36 = vld [vmem:[#allocation13 + $0x8] sm:$0xff] }
 0x18e   :  { %1591 = vmatmul.bf16.gmra.mxu3 %v1265_v26  ;;  %v1550_v4 = vadd.f32 %v3273_v61, %v1549_v55  ;;  %1855 = vmatpush.bf16.msra.mxu2 %v2882_v36 }
 0x18f   :  { %v1235_v41 = vpack.c.bf16 %v1230_v40, %v1230_v40 }
 0x191   :  { %v1275_v37 = vunpack.c.l.b16 %v1235_v41  ;;  %v143_v41 = vld [vmem:[#allocation2 + $0x8] sm:$0xff]  }
 0x192   :  { %v1618_v50 = vunpack.c.l.bf16 %v143_v41  ;;  %v1619_v60 = vunpack.c.h.bf16 %v143_v41 }
 0x193   :  { %v1277_v43 = vpack.c.b16 %v1275_v37, %v1274_v42  ;;  %v2881_v42 = vld [vmem:[#allocation13] sm:$0xff] }
 0x194   :  { %1856 = vmatpush.bf16.msra.mxu2 %v2881_v42 }
 0x195   :  { %1610 = vmatmul.bf16.gmra.mxu0 %v1277_v43  ;;  %v1551_v7 = vpop.f32.mrf.mxu1 }
 0x196   :  { %v1552_v19 = vadd.f32 %v3273_v61, %v1551_v7 }
 0x19d   :  { %v1554_v25 = vpop.f32.mrf.mxu1 }
 0x19e   :  { %v1555_v26 = vadd.f32 %v3273_v61, %v1554_v25 }
 0x1a5   :  { %v1556_v51 = vpop.f32.mrf.mxu1 }
 0x1a6   :  { %v1557_v54 = vadd.f32 %v3273_v61, %v1556_v51 }
 0x1e3   :  { %v1568_v58 = vpop.f32.mrf.mxu2 }
 0x1e4   :  { %v1569_v8 = vadd.f32 %v1568_v58, %v1550_v4 }
 0x1eb   :  { %v1570_v9 = vpop.f32.mrf.mxu2 }
 0x1ec   :  { %v1571_v23 = vadd.f32 %v1570_v9, %v1552_v19 }
 0x1f3   :  { %v1573_v34 = vpop.f32.mrf.mxu2 }
 0x1f4   :  { %v1574_v37 = vadd.f32 %v1573_v34, %v1555_v26 }
 0x1fb   :  { %v1575_v53 = vpop.f32.mrf.mxu2 }
 0x1fc   :  { %v1576_v49 = vadd.f32 %v1575_v53, %v1557_v54 }
 0x201   :  { %v1587_v10 = vpop.f32.mrf.mxu3 }
 0x202   :  { %v1588_v14 = vadd.f32 %v1587_v10, %v1569_v8  ;;  %v1606_v3 = vpop.f32.mrf.mxu0 }
 0x204   :  { %v1607_v13 = vadd.f32 %v1606_v3, %v1588_v14 }
 0x206   :  { %v1620_v20 = vadd.f32 %v1616_v15, %v1607_v13 }
 0x208   :  { %v1624_v24 = vmax.f32 %v1620_v20, 0.0 }
 0x209   :  { %v1589_v27 = vpop.f32.mrf.mxu3 }
 0x20a   :  { %v1636_v30 = vadd.f32 %v2930_v21, %v1624_v24  ;;  %v1590_v31 = vadd.f32 %v1589_v27, %v1571_v23  ;;  %v1608_v32 = vpop.f32.mrf.mxu0 }
 0x20c   :  { %v1609_v35 = vadd.f32 %v1608_v32, %v1590_v31  ;;  %v1640_v39 = vpack.c.bf16 %v1636_v30, %v1636_v30 }
 0x20e   :  { %v1621_v40 = vadd.f32 %v1617_v33, %v1609_v35  ;;  %v1673_v45 = vunpack.c.l.b16 %v1640_v39 }
 0x210   :  { %v1625_v43 = vmax.f32 %v1621_v40, 0.0  ;;  %v1675_v55 = vpack.c.b16 %v1673_v45, %v1673_v45 }
 0x211   :  { %v1592_v44 = vpop.f32.mrf.mxu3 }
 0x212   :  { %v1637_v38 = vadd.f32 %v2930_v21, %v1625_v43  ;;  %v1593_v46 = vadd.f32 %v1592_v44, %v1574_v37  ;;  %v1611_v47 = vpop.f32.mrf.mxu0  ;;  %v1680_v62 = vshll.u32 %v1675_v55, 16  ;;  %v1678_v61 = vshrl.u32 %v1675_v55, 16 }
 0x214   :  { %v1612_v52 = vadd.f32 %v1611_v47, %v1593_v46  ;;  %v1641_v56 = vpack.c.bf16 %v1637_v38, %v1637_v38  ;;  %v1682_v7 = vrot.slane %v1680_v62, 1  ;;  %v2932_v46 = vld [vmem:[%s3293_s8] ss:$0 sm:$0xff]  ;;  %s3149_s8 = smov 128  }
 0x216   :  { %v1622_v48 = vadd.f32 %v1618_v50, %v1612_v52  ;;  %v1646_v63 = vunpack.c.l.b16 %v1641_v56  ;;  %v1683_v16 = vor.u32 %v1682_v7, %v1678_v61 }
 0x218   :  { %v1626_v58 = vmax.f32 %v1622_v48, 0.0  ;;  %v1648_v2 = vpack.c.b16 %v1646_v63, %v1646_v63  ;;  %v1696_v22 = vsel %vm1695_vm2, %v1683_v16, 0 }
 0x219   :  { %v1594_v59 = vpop.f32.mrf.mxu3  ;;  %v1965_v28 = vunpack.c.l.b16 %v1696_v22 }
 0x21a   :  { %v1638_v0 = vadd.f32 %v2931_v57, %v1626_v58  ;;  %v1595_v1 = vadd.f32 %v1594_v59, %v1576_v49  ;;  %v1613_v4 = vpop.f32.mrf.mxu0  ;;  %v1651_v14 = vshrl.u32 %v1648_v2, 16  ;;  %v1654_v23 = vshll.u32 %v1648_v2, 16 }
 0x21c   :  { %v1642_v5 = vpack.c.bf16 %v1638_v0, %v1638_v0  ;;  %v1614_v6 = vadd.f32 %v1613_v4, %v1595_v1  ;;  %v1653_v19 = vrot.slane %v1651_v14, 7 }
 0x21e   :  { %v1674_v8 = vunpack.c.l.b16 %v1642_v5  ;;  %v1623_v9 = vadd.f32 %v1619_v60, %v1614_v6  ;;  %v1656_v31 = vor.u32 %v1654_v23, %v1653_v19 }
 0x220   :  { %v1676_v10 = vpack.c.b16 %v1674_v8, %v1674_v8  ;;  %v1627_v11 = vmax.f32 %v1623_v9, 0.0  ;;  %v1731_v12 = vpack.c.b16 %v1674_v8, %v1673_v45  ;;  %v1669_v36 = vsel %vm1668_vm5, 0, %v1656_v31 }
 0x221   :  { %v1797_v39 = vunpack.c.l.b16 %v1669_v36 }
 0x222   :  { %v1687_v3 = vshll.u32 %v1676_v10, 16  ;;  %v1639_v15 = vadd.f32 %v2931_v57, %v1627_v11  ;;  %1789 = vmatmul.bf16.vlgmr.msra.gmra.mxu1 %v1731_v12  ;;  %v1685_v13 = vshrl.u32 %v1676_v10, 16 }
 0x224   :  { %v1689_v17 = vrot.slane %v1687_v3, 1  ;;  %v1643_v18 = vpack.c.bf16 %v1639_v15, %v1639_v15 }
 0x226   :  { %v1647_v20 = vunpack.c.l.b16 %v1643_v18  ;;  %v1690_v21 = vor.u32 %v1689_v17, %v1685_v13 }
 0x228   :  { %v1649_v24 = vpack.c.b16 %v1647_v20, %v1647_v20  ;;  %v1880_v25 = vpack.c.b16 %v1647_v20, %v1646_v63  ;;  %v1697_v27 = vsel %vm1695_vm2, %v1690_v21, 0 }
 0x229   :  { %v1966_v29 = vunpack.c.l.b16 %v1697_v27 }
 0x22a   :  { %v1658_v30 = vshrl.u32 %v1649_v24, 16  ;;  %1938 = vmatmul.bf16.vlgmr.msra.gmra.mxu3 %v1880_v25  ;;  %v1661_v34 = vshll.u32 %v1649_v24, 16 }
 0x22b   :  { %v1967_v32 = vpack.c.b16 %v1966_v29, %v1965_v28 }
 0x22c   :  { %v1660_v33 = vrot.slane %v1658_v30, 7 }
 0x22d   :  { %2025 = vmatmul.bf16.vlgmr.msrb.gmra.mxu0 %v1967_v32 }
 0x22e   :  { %v1663_v35 = vor.u32 %v1661_v34, %v1660_v33 }
 0x230   :  { %v1670_v26 = vsel %vm1668_vm5, 0, %v1663_v35 }
 0x231   :  { %v1798_v40 = vunpack.c.l.b16 %v1670_v26 }
 0x233   :  { %v1799_v41 = vpack.c.b16 %v1798_v40, %v1797_v39 }
 0x235   :  { %1857 = vmatmul.bf16.vlgmr.msra.gmra.mxu2 %v1799_v41 }
 0x29f   :  { %v1790_v42 = vpop.f32.mrf.mxu1 }
 0x2a7   :  { %v1792_v51 = vpop.f32.mrf.mxu1 }
 0x2aa   :  { %v2026_v45 = vpop.f32.mrf.mxu0 }
 0x2ad   :  { %v1939_v37 = vpop.f32.mrf.mxu3 }
 0x2b2   :  { %v2028_v56 = vpop.f32.mrf.mxu0 }
 0x2b5   :  { %v1941_v54 = vpop.f32.mrf.mxu3 }
 0x2b8   :  { %v1858_v43 = vpop.f32.mrf.mxu2 }
 0x2b9   :  { %v1859_v44 = vadd.f32 %v1858_v43, %v1790_v42 }
 0x2bb   :  { %v1944_v38 = vadd.f32 %v1939_v37, %v1859_v44 }
 0x2bd   :  { %v2031_v47 = vadd.f32 %v2026_v45, %v1944_v38 }
 0x2bf   :  { %v2037_v50 = vadd.f32 %v2932_v46, %v2031_v47 }
 0x2c0   :  { %v1860_v52 = vpop.f32.mrf.mxu2 }
 0x2c1   :  { %2039 = vst [vmem:[#allocation14] sm:$0xff] %v2037_v50  ;;  %v1861_v53 = vadd.f32 %v1860_v52, %v1792_v51 }
 0x2c3   :  { %v1945_v55 = vadd.f32 %v1941_v54, %v1861_v53 }
 0x2c5   :  { %v2032_v48 = vadd.f32 %v2028_v56, %v1945_v55 }
 0x2c7   :  { %v2038_v57 = vadd.f32 %v2932_v46, %v2032_v48 }
 0x2c9   :  { %2040 = vst [vmem:[#allocation14 + $0x8] sm:$0xff] %v2038_v57 }
 0x2ca   :  { %2053 = dma.vmem_to_hbm [thread:$0]  %s2046_s24, 256, %s2048_s26, [#allocation4], %s3149_s8, %s3149_s8, %s3150_s27  }
 0x2cb   :  { %3133 = dma.done.wait [#allocation4], 256  }
 0x2cc   :  { %3134 = vsyncadd [#allocation4], 4294967040 }
 0x2cd   :  { %2058 = vsyncpa [#allocation3], 1 }
 0x2ce   :  { %2059 = vsyncpa [#allocation6], 1 }
 0x2cf   :  { %2060 = vsyncpa [#allocation9], 1 }
 0x2d0   :  { %2061 = vsyncpa [#allocation12], 1 }
 0x2d1   :  { %2062 = vsyncpa [#allocation4], 1 }

</bundles_post_ra>
